<compile_context>
chip_gen: v6e
topology: v6e:2x2x1
jax: 0.10.0
libtpu: 0.0.40
codegen_flags: <defaults>
</compile_context>

<pallas_src>
import jax
import jax.numpy as jnp
from jax.experimental import pallas as pl
from jax.experimental.pallas import tpu as pltpu

NEG_SLOPE = 0.01   # nn.LeakyReLU / F.leaky_relu default
BN_EPS = 1e-5      # BatchNorm1d default eps


def _leaky(x):
    return jnp.where(x > 0, x, NEG_SLOPE * x)


def _mxu(a, b):
    # bf16 MXU inputs, f32 accumulation (per perf review); epilogues stay f32 on the VPU.
    return jnp.dot(a.astype(jnp.bfloat16), b.astype(jnp.bfloat16),
                   preferred_element_type=jnp.float32)


# ------------------------------ fused kernel --------------------------------

def fused_edgeconv_kernel(x_ref, nw_ref, nb_ref,          # node features + node_emb Linear
                          tg_ref, sg_ref, sc_ref,         # one-hot gather(tgt), gather(src), scatter
                          wt_ref, ws_ref, b1_ref,         # per-layer EdgeConv MLP Linear1 (split)
                          w2_ref, b2_ref,                 # per-layer EdgeConv MLP Linear2
                          scale_ref, shift_ref,           # per-layer folded BatchNorm (eval)
                          pool_ref,                       # one-hot graph-membership (global_add_pool)
                          rw1_ref, rb1_ref, rw2_ref, rb2_ref,  # readout MLP
                          out_ref,                        # (Gp, Op) output
                          h_ref):                         # VMEM scratch: resident node features
    l = pl.program_id(0)

    # ---- node embedding once, at layer 0; h stays resident in VMEM for all layers.
    @pl.when(l == 0)
    def _():
        h_ref[...] = _mxu(x_ref[...], nw_ref[...]) + nb_ref[...]

    h = h_ref[...]                                         # (Np, Hp) f32
    # EdgeConv message MLP: Linear(2H->H) on [x_i, x_j - x_i] folded into two projections of h.
    pt = _mxu(h, wt_ref[...])                              # x_i part:  h @ (W1_i - W1_d)
    ps = _mxu(h, ws_ref[...])                              # x_j part:  h @ W1_d
    e = _leaky(_mxu(tg_ref[...], pt) + _mxu(sg_ref[...], ps) + b1_ref[...])   # (Ep, Hp)
    msg = _mxu(e, w2_ref[...]) + b2_ref[...]               # (Ep, Hp)
    agg = _mxu(sc_ref[...], msg)                           # sum over incoming edges -> (Np, Hp)
    # eval-mode BatchNorm folded to one FMA, then LeakyReLU. Inter-layer Dropout = identity (eval).
    h_ref[...] = _leaky(agg * scale_ref[...] + shift_ref[...])

    # ---- global_add_pool + readout MLP only after the last layer.
    @pl.when(l == pl.num_programs(0) - 1)
    def _():
        g = _mxu(pool_ref[...], h_ref[...])                # (Gp, Hp)
        r = _leaky(_mxu(g, rw1_ref[...]) + rb1_ref[...])   # Dropout in readout = identity (eval)
        out_ref[...] = _mxu(r, rw2_ref[...]) + rb2_ref[...]


# ------------------------------- parameters ---------------------------------

def init_params(key, num_node_features, edge_feature_dim, hidden_dim, output_dim, num_layers):
    # edge_feature_dim accepted for constructor parity but unused: EdgeConv ignores edge_attr.
    del edge_feature_dim
    state = [key]

    def nk():
        state[0], sub = jax.random.split(state[0])
        return sub

    def lin(fan_in, fan_out):
        lim = float(fan_in) ** -0.5
        w = jax.random.uniform(nk(), (fan_in, fan_out), jnp.float32, -lim, lim)
        b = jax.random.uniform(nk(), (1, fan_out), jnp.float32, -lim, lim)
        return w, b

    p = {}
    p['node_w'], p['node_b'] = lin(num_node_features, hidden_dim)

    layers = []
    for _ in range(num_layers):
        w1, b1 = lin(2 * hidden_dim, hidden_dim)   # EdgeConv nn: Linear(2H, H)
        w2, b2 = lin(hidden_dim, hidden_dim)       #              Linear(H, H)
        gamma = 1.0 + 0.05 * jax.random.normal(nk(), (1, hidden_dim), jnp.float32)
        beta = 0.05 * jax.random.normal(nk(), (1, hidden_dim), jnp.float32)
        mean = 0.1 * jax.random.normal(nk(), (1, hidden_dim), jnp.float32)
        var = 1.0 + 0.1 * jax.random.uniform(nk(), (1, hidden_dim), jnp.float32)
        layers.append(dict(w1=w1, b1=b1, w2=w2, b2=b2,
                           gamma=gamma, beta=beta, mean=mean, var=var))
    p['layers'] = layers

    p['ro_w1'], p['ro_b1'] = lin(hidden_dim, hidden_dim // 2)
    p['ro_w2'], p['ro_b2'] = lin(hidden_dim // 2, output_dim)
    return p


# --------------------------------- forward ----------------------------------

def edgeconv_forward(params, x, edge_index, edge_attr, batch, num_graphs):
    del edge_attr  # EdgeConv uses only (x, edge_index); edge features are ignored by the module.
    f32, bf16 = jnp.float32, jnp.bfloat16

    N, F = x.shape
    E = edge_index.shape[1]
    H = params['node_w'].shape[1]
    H2 = params['ro_w1'].shape[1]
    O = params['ro_w2'].shape[1]
    L = len(params['layers'])
    G = num_graphs

    def rup(v, m):
        return ((v + m - 1) // m) * m

    Np, Ep, Gp = rup(N, 8), rup(E, 8), rup(G, 8)
    Fp, Hp, H2p, Op = rup(F, 128), rup(H, 128), rup(H2, 128), rup(O, 128)

    def pad2(a, r, c):
        return jnp.zeros((r, c), f32).at[:a.shape[0], :a.shape[1]].set(a)

    # ---- padded dense operands (padded rows/cols never reach real outputs:
    #      gather/scatter/pool one-hot matrices only select real node / edge / graph ids).
    x_p = pad2(x.astype(f32), Np, Fp)
    nw_p = pad2(params['node_w'], Fp, Hp)
    nb_p = pad2(params['node_b'], 1, Hp)

    # ---- one-hot gather / scatter / pool matrices (exact in bf16; halves their DMA bytes).
    src, tgt = edge_index[0], edge_index[1]                       # PyG: j -> i
    src_p = jnp.pad(src, (0, Ep - E), constant_values=-1)
    tgt_p = jnp.pad(tgt, (0, Ep - E), constant_values=-1)
    batch_p = jnp.pad(batch, (0, Np - N), constant_values=-1)
    node_ids = jnp.arange(Np, dtype=edge_index.dtype)
    gth_t = (tgt_p[:, None] == node_ids[None, :]).astype(bf16)    # (Ep, Np): gathers x_i
    gth_s = (src_p[:, None] == node_ids[None, :]).astype(bf16)    # (Ep, Np): gathers x_j
    scat = gth_t.T                                                # (Np, Ep): add-aggregate at target
    pool = (jnp.arange(Gp, dtype=batch.dtype)[:, None] == batch_p[None, :]).astype(bf16)  # (Gp, Np)

    # ---- stack + pad per-layer weights; fold concat and eval-BatchNorm on the host.
    wt = jnp.zeros((L, Hp, Hp), f32)
    ws = jnp.zeros((L, Hp, Hp), f32)
    w2 = jnp.zeros((L, Hp, Hp), f32)
    b1 = jnp.zeros((L, 1, Hp), f32)
    b2 = jnp.zeros((L, 1, Hp), f32)
    scale = jnp.ones((L, 1, Hp), f32)     # padded lanes: scale=1, shift=0 keeps them at 0
    shift = jnp.zeros((L, 1, Hp), f32)
    for i, lp in enumerate(params['layers']):
        w1_i, w1_d = lp['w1'][:H], lp['w1'][H:]                   # applied to x_i and (x_j - x_i)
        sc = lp['gamma'] * jax.lax.rsqrt(lp['var'] + BN_EPS)
        sh = lp['beta'] - lp['mean'] * sc
        wt = wt.at[i, :H, :H].set(w1_i - w1_d)
        ws = ws.at[i, :H, :H].set(w1_d)
        w2 = w2.at[i, :H, :H].set(lp['w2'])
        b1 = b1.at[i, :, :H].set(lp['b1'])
        b2 = b2.at[i, :, :H].set(lp['b2'])
        scale = scale.at[i, :, :H].set(sc)
        shift = shift.at[i, :, :H].set(sh)

    rw1_p = pad2(params['ro_w1'], Hp, H2p)
    rb1_p = pad2(params['ro_b1'], 1, H2p)
    rw2_p = pad2(params['ro_w2'], H2p, Op)
    rb2_p = pad2(params['ro_b2'], 1, Op)

    # ---- single fused pallas_call over grid=(num_layers,)
    def full(shape):
        return pl.BlockSpec(shape, lambda l, _s=shape: (0,) * len(_s))

    layer_mat = pl.BlockSpec((None, Hp, Hp), lambda l: (l, 0, 0))
    layer_vec = pl.BlockSpec((None, 1, Hp), lambda l: (l, 0, 0))

    out_p = pl.pallas_call(
        fused_edgeconv_kernel,
        out_shape=jax.ShapeDtypeStruct((Gp, Op), f32),
        grid_spec=pltpu.PrefetchScalarGridSpec(
            num_scalar_prefetch=0,
            grid=(L,),
            in_specs=[
                full((Np, Fp)), full((Fp, Hp)), full((1, Hp)),
                full((Ep, Np)), full((Ep, Np)), full((Np, Ep)),
                layer_mat, layer_mat, layer_vec,
                layer_mat, layer_vec,
                layer_vec, layer_vec,
                full((Gp, Np)),
                full((Hp, H2p)), full((1, H2p)),
                full((H2p, Op)), full((1, Op)),
            ],
            out_specs=pl.BlockSpec((Gp, Op), lambda l: (0, 0)),
            scratch_shapes=[pltpu.VMEM((Np, Hp), f32)],
        ),
        compiler_params=pltpu.CompilerParams(
            dimension_semantics=("arbitrary",),          # layers are sequential
            vmem_limit_bytes=32 * 1024 * 1024,
        ),
    )(x_p, nw_p, nb_p, gth_t, gth_s, scat,
      wt, ws, b1, w2, b2, scale, shift,
      pool, rw1_p, rb1_p, rw2_p, rb2_p)

    return out_p[:G, :O]


# ----------------------------------- demo ------------------------------------

if __name__ == "__main__":
    key = jax.random.PRNGKey(0)
    k_param, k_x, k_e, k_attr = jax.random.split(key, 4)

    # small synthetic graph batch: 2 graphs x 8 nodes each
    num_node_features = 8
    edge_feature_dim = 4
    hidden_dim = 32
    output_dim = 3
    num_gnn_layers = 3
    N, E_per_graph = 16, 16
    num_graphs = 2

    x = jax.random.normal(k_x, (N, num_node_features), jnp.float32)

    ke0, ke1 = jax.random.split(k_e)
    ei0 = jax.random.randint(ke0, (2, E_per_graph), 0, 8)          # graph 0: nodes 0..7
    ei1 = jax.random.randint(ke1, (2, E_per_graph), 0, 8) + 8      # graph 1: nodes 8..15
    edge_index = jnp.concatenate([ei0, ei1], axis=1).astype(jnp.int32)   # (2, 32)
    E = edge_index.shape[1]

    edge_attr = jax.random.normal(k_attr, (E, edge_feature_dim), jnp.float32)  # unused by EdgeConv
    batch = jnp.concatenate([jnp.zeros((8,), jnp.int32), jnp.ones((8,), jnp.int32)])

    params = init_params(k_param, num_node_features, edge_feature_dim,
                         hidden_dim, output_dim, num_gnn_layers)

    out = edgeconv_forward(params, x, edge_index, edge_attr, batch, num_graphs)
    out = jax.block_until_ready(out)
    assert out.shape == (num_graphs, output_dim)
    assert bool(jnp.all(jnp.isfinite(out)))
    print("KERNEL_OK")
</pallas_src>

<mosaic_0001>
module attributes {stable_mosaic.version = 11 : i64} {
  func.func @fused_edgeconv_kernel(%arg0: i32, %arg1: memref<16x128xf32, #tpu.memory_space<vmem>>, %arg2: memref<128x128xf32, #tpu.memory_space<vmem>>, %arg3: memref<1x128xf32, #tpu.memory_space<vmem>>, %arg4: memref<32x16xbf16, #tpu.memory_space<vmem>>, %arg5: memref<32x16xbf16, #tpu.memory_space<vmem>>, %arg6: memref<16x32xbf16, #tpu.memory_space<vmem>>, %arg7: memref<1x128x128xf32, #tpu.memory_space<vmem>>, %arg8: memref<1x128x128xf32, #tpu.memory_space<vmem>>, %arg9: memref<1x1x128xf32, #tpu.memory_space<vmem>>, %arg10: memref<1x128x128xf32, #tpu.memory_space<vmem>>, %arg11: memref<1x1x128xf32, #tpu.memory_space<vmem>>, %arg12: memref<1x1x128xf32, #tpu.memory_space<vmem>>, %arg13: memref<1x1x128xf32, #tpu.memory_space<vmem>>, %arg14: memref<8x16xbf16, #tpu.memory_space<vmem>>, %arg15: memref<128x128xf32, #tpu.memory_space<vmem>>, %arg16: memref<1x128xf32, #tpu.memory_space<vmem>>, %arg17: memref<128x128xf32, #tpu.memory_space<vmem>>, %arg18: memref<1x128xf32, #tpu.memory_space<vmem>>, %arg19: memref<8x128xf32, #tpu.memory_space<vmem>>, %arg20: memref<16x128xf32, #tpu.memory_space<vmem>>) attributes {dimension_semantics = [#tpu.dimension_semantics<arbitrary>], iteration_bounds = array<i64: 3>, scalar_prefetch = 0 : i64, scratch_operands = 1 : i64, tpu.core_type = #tpu.core_type<tc>, window_params = [{pipeline_mode = #tpu.pipeline_mode<synchronous>, transform_indices = @transform_0, window_bounds = array<i64: 16, 128>}, {pipeline_mode = #tpu.pipeline_mode<synchronous>, transform_indices = @transform_1, window_bounds = array<i64: 128, 128>}, {pipeline_mode = #tpu.pipeline_mode<synchronous>, transform_indices = @transform_2, window_bounds = array<i64: 1, 128>}, {pipeline_mode = #tpu.pipeline_mode<synchronous>, transform_indices = @transform_3, window_bounds = array<i64: 32, 16>}, {pipeline_mode = #tpu.pipeline_mode<synchronous>, transform_indices = @transform_4, window_bounds = array<i64: 32, 16>}, {pipeline_mode = #tpu.pipeline_mode<synchronous>, transform_indices = @transform_5, window_bounds = array<i64: 16, 32>}, {transform_indices = @transform_6, window_bounds = array<i64: 1, 128, 128>}, {transform_indices = @transform_7, window_bounds = array<i64: 1, 128, 128>}, {transform_indices = @transform_8, window_bounds = array<i64: 1, 1, 128>}, {transform_indices = @transform_9, window_bounds = array<i64: 1, 128, 128>}, {transform_indices = @transform_10, window_bounds = array<i64: 1, 1, 128>}, {transform_indices = @transform_11, window_bounds = array<i64: 1, 1, 128>}, {transform_indices = @transform_12, window_bounds = array<i64: 1, 1, 128>}, {pipeline_mode = #tpu.pipeline_mode<synchronous>, transform_indices = @transform_13, window_bounds = array<i64: 8, 16>}, {pipeline_mode = #tpu.pipeline_mode<synchronous>, transform_indices = @transform_14, window_bounds = array<i64: 128, 128>}, {pipeline_mode = #tpu.pipeline_mode<synchronous>, transform_indices = @transform_15, window_bounds = array<i64: 1, 128>}, {pipeline_mode = #tpu.pipeline_mode<synchronous>, transform_indices = @transform_16, window_bounds = array<i64: 128, 128>}, {pipeline_mode = #tpu.pipeline_mode<synchronous>, transform_indices = @transform_17, window_bounds = array<i64: 1, 128>}, {pipeline_mode = #tpu.pipeline_mode<synchronous>, transform_indices = @transform_18, window_bounds = array<i64: 8, 128>}]} {
    %c0_i32 = arith.constant 0 : i32
    %0 = arith.cmpi eq, %arg0, %c0_i32 : i32
    %1 = arith.extui %0 : i1 to i32
    %c0_i32_0 = arith.constant 0 : i32
    %2 = arith.cmpi ne, %1, %c0_i32_0 : i32
    scf.if %2 {
      %c0_41 = arith.constant 0 : index
      %c0_42 = arith.constant 0 : index
      %59 = vector.load %arg1[%c0_41, %c0_42] : memref<16x128xf32, #tpu.memory_space<vmem>>, vector<16x128xf32>
      %c0_43 = arith.constant 0 : index
      %c0_44 = arith.constant 0 : index
      %60 = vector.load %arg2[%c0_43, %c0_44] : memref<128x128xf32, #tpu.memory_space<vmem>>, vector<128x128xf32>
      %61 = arith.truncf %59 : vector<16x128xf32> to vector<16x128xbf16>
      %62 = arith.truncf %60 : vector<128x128xf32> to vector<128x128xbf16>
      %cst_45 = arith.constant dense<0.000000e+00> : vector<16x128xf32>
      %63 = tpu.matmul %61, %62, %cst_45 {dimension_numbers = #tpu.dot_dimension_numbers<[1], [0], [0], [1], [0, 0, 1, 1], [], []>} : vector<16x128xbf16>, vector<128x128xbf16>, vector<16x128xf32> -> vector<16x128xf32>
      %c0_46 = arith.constant 0 : index
      %c0_47 = arith.constant 0 : index
      %64 = vector.load %arg3[%c0_46, %c0_47] : memref<1x128xf32, #tpu.memory_space<vmem>>, vector<1x128xf32>
      %65 = vector.broadcast %64 : vector<1x128xf32> to vector<16x128xf32>
      %66 = arith.addf %63, %65 : vector<16x128xf32>
      %c0_48 = arith.constant 0 : index
      %c0_49 = arith.constant 0 : index
      %67 = vector.load %arg20[%c0_48, %c0_49] : memref<16x128xf32, #tpu.memory_space<vmem>>, vector<16x128xf32>
      tpu.vector_store %arg20[%c0_48, %c0_49], %66 {strides = array<i32>} : memref<16x128xf32, #tpu.memory_space<vmem>>, vector<16x128xf32>,
    } else {
    }
    %c0 = arith.constant 0 : index
    %c0_1 = arith.constant 0 : index
    %3 = vector.load %arg20[%c0, %c0_1] : memref<16x128xf32, #tpu.memory_space<vmem>>, vector<16x128xf32>
    %c0_2 = arith.constant 0 : index
    %c0_3 = arith.constant 0 : index
    %c0_4 = arith.constant 0 : index
    %4 = vector.load %arg7[%c0_2, %c0_3, %c0_4] : memref<1x128x128xf32, #tpu.memory_space<vmem>>, vector<1x128x128xf32>
    %5 = vector.shape_cast %4 : vector<1x128x128xf32> to vector<128x128xf32>
    %6 = arith.truncf %3 : vector<16x128xf32> to vector<16x128xbf16>
    %7 = arith.truncf %5 : vector<128x128xf32> to vector<128x128xbf16>
    %cst = arith.constant dense<0.000000e+00> : vector<16x128xf32>
    %8 = tpu.matmul %6, %7, %cst {dimension_numbers = #tpu.dot_dimension_numbers<[1], [0], [0], [1], [0, 0, 1, 1], [], []>} : vector<16x128xbf16>, vector<128x128xbf16>, vector<16x128xf32> -> vector<16x128xf32>
    %c0_5 = arith.constant 0 : index
    %c0_6 = arith.constant 0 : index
    %c0_7 = arith.constant 0 : index
    %9 = vector.load %arg8[%c0_5, %c0_6, %c0_7] : memref<1x128x128xf32, #tpu.memory_space<vmem>>, vector<1x128x128xf32>
    %10 = vector.shape_cast %9 : vector<1x128x128xf32> to vector<128x128xf32>
    %11 = arith.truncf %3 : vector<16x128xf32> to vector<16x128xbf16>
    %12 = arith.truncf %10 : vector<128x128xf32> to vector<128x128xbf16>
    %cst_8 = arith.constant dense<0.000000e+00> : vector<16x128xf32>
    %13 = tpu.matmul %11, %12, %cst_8 {dimension_numbers = #tpu.dot_dimension_numbers<[1], [0], [0], [1], [0, 0, 1, 1], [], []>} : vector<16x128xbf16>, vector<128x128xbf16>, vector<16x128xf32> -> vector<16x128xf32>
    %c0_9 = arith.constant 0 : index
    %c0_10 = arith.constant 0 : index
    %14 = vector.load %arg4[%c0_9, %c0_10] : memref<32x16xbf16, #tpu.memory_space<vmem>>, vector<32x16xbf16>
    %15 = arith.truncf %8 : vector<16x128xf32> to vector<16x128xbf16>
    %cst_11 = arith.constant dense<0.000000e+00> : vector<32x128xf32>
    %16 = tpu.matmul %14, %15, %cst_11 {dimension_numbers = #tpu.dot_dimension_numbers<[1], [0], [0], [1], [0, 0, 1, 1], [], []>} : vector<32x16xbf16>, vector<16x128xbf16>, vector<32x128xf32> -> vector<32x128xf32>
    %c0_12 = arith.constant 0 : index
    %c0_13 = arith.constant 0 : index
    %17 = vector.load %arg5[%c0_12, %c0_13] : memref<32x16xbf16, #tpu.memory_space<vmem>>, vector<32x16xbf16>
    %18 = arith.truncf %13 : vector<16x128xf32> to vector<16x128xbf16>
    %cst_14 = arith.constant dense<0.000000e+00> : vector<32x128xf32>
    %19 = tpu.matmul %17, %18, %cst_14 {dimension_numbers = #tpu.dot_dimension_numbers<[1], [0], [0], [1], [0, 0, 1, 1], [], []>} : vector<32x16xbf16>, vector<16x128xbf16>, vector<32x128xf32> -> vector<32x128xf32>
    %20 = arith.addf %16, %19 : vector<32x128xf32>
    %c0_15 = arith.constant 0 : index
    %c0_16 = arith.constant 0 : index
    %c0_17 = arith.constant 0 : index
    %21 = vector.load %arg9[%c0_15, %c0_16, %c0_17] : memref<1x1x128xf32, #tpu.memory_space<vmem>>, vector<1x1x128xf32>
    %22 = vector.shape_cast %21 : vector<1x1x128xf32> to vector<1x128xf32>
    %23 = vector.broadcast %22 : vector<1x128xf32> to vector<32x128xf32>
    %24 = arith.addf %20, %23 : vector<32x128xf32>
    %cst_18 = arith.constant 0.000000e+00 : f32
    %25 = vector.broadcast %cst_18 : f32 to vector<32x128xf32>
    %26 = arith.cmpf ogt, %24, %25 : vector<32x128xf32>
    %cst_19 = arith.constant 0.00999999977 : f32
    %27 = vector.broadcast %cst_19 : f32 to vector<32x128xf32>
    %28 = arith.mulf %27, %24 : vector<32x128xf32>
    %29 = arith.select %26, %24, %28 : vector<32x128xi1>, vector<32x128xf32>
    %c0_20 = arith.constant 0 : index
    %c0_21 = arith.constant 0 : index
    %c0_22 = arith.constant 0 : index
    %30 = vector.load %arg10[%c0_20, %c0_21, %c0_22] : memref<1x128x128xf32, #tpu.memory_space<vmem>>, vector<1x128x128xf32>
    %31 = vector.shape_cast %30 : vector<1x128x128xf32> to vector<128x128xf32>
    %32 = arith.truncf %29 : vector<32x128xf32> to vector<32x128xbf16>
    %33 = arith.truncf %31 : vector<128x128xf32> to vector<128x128xbf16>
    %cst_23 = arith.constant dense<0.000000e+00> : vector<32x128xf32>
    %34 = tpu.matmul %32, %33, %cst_23 {dimension_numbers = #tpu.dot_dimension_numbers<[1], [0], [0], [1], [0, 0, 1, 1], [], []>} : vector<32x128xbf16>, vector<128x128xbf16>, vector<32x128xf32> -> vector<32x128xf32>
    %c0_24 = arith.constant 0 : index
    %c0_25 = arith.constant 0 : index
    %c0_26 = arith.constant 0 : index
    %35 = vector.load %arg11[%c0_24, %c0_25, %c0_26] : memref<1x1x128xf32, #tpu.memory_space<vmem>>, vector<1x1x128xf32>
    %36 = vector.shape_cast %35 : vector<1x1x128xf32> to vector<1x128xf32>
    %37 = vector.broadcast %36 : vector<1x128xf32> to vector<32x128xf32>
    %38 = arith.addf %34, %37 : vector<32x128xf32>
    %c0_27 = arith.constant 0 : index
    %c0_28 = arith.constant 0 : index
    %39 = vector.load %arg6[%c0_27, %c0_28] : memref<16x32xbf16, #tpu.memory_space<vmem>>, vector<16x32xbf16>
    %40 = arith.truncf %38 : vector<32x128xf32> to vector<32x128xbf16>
    %cst_29 = arith.constant dense<0.000000e+00> : vector<16x128xf32>
    %41 = tpu.matmul %39, %40, %cst_29 {dimension_numbers = #tpu.dot_dimension_numbers<[1], [0], [0], [1], [0, 0, 1, 1], [], []>} : vector<16x32xbf16>, vector<32x128xbf16>, vector<16x128xf32> -> vector<16x128xf32>
    %c0_30 = arith.constant 0 : index
    %c0_31 = arith.constant 0 : index
    %c0_32 = arith.constant 0 : index
    %42 = vector.load %arg12[%c0_30, %c0_31, %c0_32] : memref<1x1x128xf32, #tpu.memory_space<vmem>>, vector<1x1x128xf32>
    %43 = vector.shape_cast %42 : vector<1x1x128xf32> to vector<1x128xf32>
    %44 = vector.broadcast %43 : vector<1x128xf32> to vector<16x128xf32>
    %45 = arith.mulf %41, %44 : vector<16x128xf32>
    %c0_33 = arith.constant 0 : index
    %c0_34 = arith.constant 0 : index
    %c0_35 = arith.constant 0 : index
    %46 = vector.load %arg13[%c0_33, %c0_34, %c0_35] : memref<1x1x128xf32, #tpu.memory_space<vmem>>, vector<1x1x128xf32>
    %47 = vector.shape_cast %46 : vector<1x1x128xf32> to vector<1x128xf32>
    %48 = vector.broadcast %47 : vector<1x128xf32> to vector<16x128xf32>
    %49 = arith.addf %45, %48 : vector<16x128xf32>
    %cst_36 = arith.constant 0.000000e+00 : f32
    %50 = vector.broadcast %cst_36 : f32 to vector<16x128xf32>
    %51 = arith.cmpf ogt, %49, %50 : vector<16x128xf32>
    %cst_37 = arith.constant 0.00999999977 : f32
    %52 = vector.broadcast %cst_37 : f32 to vector<16x128xf32>
    %53 = arith.mulf %52, %49 : vector<16x128xf32>
    %54 = arith.select %51, %49, %53 : vector<16x128xi1>, vector<16x128xf32>
    %c0_38 = arith.constant 0 : index
    %c0_39 = arith.constant 0 : index
    %55 = vector.load %arg20[%c0_38, %c0_39] : memref<16x128xf32, #tpu.memory_space<vmem>>, vector<16x128xf32>
    tpu.vector_store %arg20[%c0_38, %c0_39], %54 {strides = array<i32>} : memref<16x128xf32, #tpu.memory_space<vmem>>, vector<16x128xf32>,
    %c2_i32 = arith.constant 2 : i32
    %56 = arith.cmpi eq, %arg0, %c2_i32 : i32
    %57 = arith.extui %56 : i1 to i32
    %c0_i32_40 = arith.constant 0 : i32
    %58 = arith.cmpi ne, %57, %c0_i32_40 : i32
    scf.if %58 {
      %c0_41 = arith.constant 0 : index
      %c0_42 = arith.constant 0 : index
      %59 = vector.load %arg14[%c0_41, %c0_42] : memref<8x16xbf16, #tpu.memory_space<vmem>>, vector<8x16xbf16>
      %c0_43 = arith.constant 0 : index
      %c0_44 = arith.constant 0 : index
      %60 = vector.load %arg20[%c0_43, %c0_44] : memref<16x128xf32, #tpu.memory_space<vmem>>, vector<16x128xf32>
      %61 = arith.truncf %60 : vector<16x128xf32> to vector<16x128xbf16>
      %cst_45 = arith.constant dense<0.000000e+00> : vector<8x128xf32>
      %62 = tpu.matmul %59, %61, %cst_45 {dimension_numbers = #tpu.dot_dimension_numbers<[1], [0], [0], [1], [0, 0, 1, 1], [], []>} : vector<8x16xbf16>, vector<16x128xbf16>, vector<8x128xf32> -> vector<8x128xf32>
      %c0_46 = arith.constant 0 : index
      %c0_47 = arith.constant 0 : index
      %63 = vector.load %arg15[%c0_46, %c0_47] : memref<128x128xf32, #tpu.memory_space<vmem>>, vector<128x128xf32>
      %64 = arith.truncf %62 : vector<8x128xf32> to vector<8x128xbf16>
      %65 = arith.truncf %63 : vector<128x128xf32> to vector<128x128xbf16>
      %cst_48 = arith.constant dense<0.000000e+00> : vector<8x128xf32>
      %66 = tpu.matmul %64, %65, %cst_48 {dimension_numbers = #tpu.dot_dimension_numbers<[1], [0], [0], [1], [0, 0, 1, 1], [], []>} : vector<8x128xbf16>, vector<128x128xbf16>, vector<8x128xf32> -> vector<8x128xf32>
      %c0_49 = arith.constant 0 : index
      %c0_50 = arith.constant 0 : index
      %67 = vector.load %arg16[%c0_49, %c0_50] : memref<1x128xf32, #tpu.memory_space<vmem>>, vector<1x128xf32>
      %68 = vector.broadcast %67 : vector<1x128xf32> to vector<8x128xf32>
      %69 = arith.addf %66, %68 : vector<8x128xf32>
      %cst_51 = arith.constant 0.000000e+00 : f32
      %70 = vector.broadcast %cst_51 : f32 to vector<8x128xf32>
      %71 = arith.cmpf ogt, %69, %70 : vector<8x128xf32>
      %cst_52 = arith.constant 0.00999999977 : f32
      %72 = vector.broadcast %cst_52 : f32 to vector<8x128xf32>
      %73 = arith.mulf %72, %69 : vector<8x128xf32>
      %74 = arith.select %71, %69, %73 : vector<8x128xi1>, vector<8x128xf32>
      %c0_53 = arith.constant 0 : index
      %c0_54 = arith.constant 0 : index
      %75 = vector.load %arg17[%c0_53, %c0_54] : memref<128x128xf32, #tpu.memory_space<vmem>>, vector<128x128xf32>
      %76 = arith.truncf %74 : vector<8x128xf32> to vector<8x128xbf16>
      %77 = arith.truncf %75 : vector<128x128xf32> to vector<128x128xbf16>
      %cst_55 = arith.constant dense<0.000000e+00> : vector<8x128xf32>
      %78 = tpu.matmul %76, %77, %cst_55 {dimension_numbers = #tpu.dot_dimension_numbers<[1], [0], [0], [1], [0, 0, 1, 1], [], []>} : vector<8x128xbf16>, vector<128x128xbf16>, vector<8x128xf32> -> vector<8x128xf32>
      %c0_56 = arith.constant 0 : index
      %c0_57 = arith.constant 0 : index
      %79 = vector.load %arg18[%c0_56, %c0_57] : memref<1x128xf32, #tpu.memory_space<vmem>>, vector<1x128xf32>
      %80 = vector.broadcast %79 : vector<1x128xf32> to vector<8x128xf32>
      %81 = arith.addf %78, %80 : vector<8x128xf32>
      %c0_58 = arith.constant 0 : index
      %c0_59 = arith.constant 0 : index
      %82 = vector.load %arg19[%c0_58, %c0_59] : memref<8x128xf32, #tpu.memory_space<vmem>>, vector<8x128xf32>
      tpu.vector_store %arg19[%c0_58, %c0_59], %81 {strides = array<i32>} : memref<8x128xf32, #tpu.memory_space<vmem>>, vector<8x128xf32>,
    } else {
    }
    return
  }
  func.func @transform_0(%arg0: i32) -> (i32, i32) {
    %c0_i32 = arith.constant 0 : i32
    %c0_i32_0 = arith.constant 0 : i32
    %c0_i32_1 = arith.constant 0 : i32
    return %c0_i32, %c0_i32_0 : i32, i32
  }
  func.func @transform_1(%arg0: i32) -> (i32, i32) {
    %c0_i32 = arith.constant 0 : i32
    %c0_i32_0 = arith.constant 0 : i32
    %c0_i32_1 = arith.constant 0 : i32
    return %c0_i32, %c0_i32_0 : i32, i32
  }
  func.func @transform_2(%arg0: i32) -> (i32, i32) {
    %c0_i32 = arith.constant 0 : i32
    %c0_i32_0 = arith.constant 0 : i32
    %c0_i32_1 = arith.constant 0 : i32
    return %c0_i32, %c0_i32_0 : i32, i32
  }
  func.func @transform_3(%arg0: i32) -> (i32, i32) {
    %c0_i32 = arith.constant 0 : i32
    %c0_i32_0 = arith.constant 0 : i32
    %c0_i32_1 = arith.constant 0 : i32
    return %c0_i32, %c0_i32_0 : i32, i32
  }
  func.func @transform_4(%arg0: i32) -> (i32, i32) {
    %c0_i32 = arith.constant 0 : i32
    %c0_i32_0 = arith.constant 0 : i32
    %c0_i32_1 = arith.constant 0 : i32
    return %c0_i32, %c0_i32_0 : i32, i32
  }
  func.func @transform_5(%arg0: i32) -> (i32, i32) {
    %c0_i32 = arith.constant 0 : i32
    %c0_i32_0 = arith.constant 0 : i32
    %c0_i32_1 = arith.constant 0 : i32
    return %c0_i32, %c0_i32_0 : i32, i32
  }
  func.func @transform_6(%arg0: i32) -> (i32, i32, i32) {
    %c0_i32 = arith.constant 0 : i32
    %c0_i32_0 = arith.constant 0 : i32
    %c0_i32_1 = arith.constant 0 : i32
    return %arg0, %c0_i32, %c0_i32_0 : i32, i32, i32
  }
  func.func @transform_7(%arg0: i32) -> (i32, i32, i32) {
    %c0_i32 = arith.constant 0 : i32
    %c0_i32_0 = arith.constant 0 : i32
    %c0_i32_1 = arith.constant 0 : i32
    return %arg0, %c0_i32, %c0_i32_0 : i32, i32, i32
  }
  func.func @transform_8(%arg0: i32) -> (i32, i32, i32) {
    %c0_i32 = arith.constant 0 : i32
    %c0_i32_0 = arith.constant 0 : i32
    %c0_i32_1 = arith.constant 0 : i32
    return %arg0, %c0_i32, %c0_i32_0 : i32, i32, i32
  }
  func.func @transform_9(%arg0: i32) -> (i32, i32, i32) {
    %c0_i32 = arith.constant 0 : i32
    %c0_i32_0 = arith.constant 0 : i32
    %c0_i32_1 = arith.constant 0 : i32
    return %arg0, %c0_i32, %c0_i32_0 : i32, i32, i32
  }
  func.func @transform_10(%arg0: i32) -> (i32, i32, i32) {
    %c0_i32 = arith.constant 0 : i32
    %c0_i32_0 = arith.constant 0 : i32
    %c0_i32_1 = arith.constant 0 : i32
    return %arg0, %c0_i32, %c0_i32_0 : i32, i32, i32
  }
  func.func @transform_11(%arg0: i32) -> (i32, i32, i32) {
    %c0_i32 = arith.constant 0 : i32
    %c0_i32_0 = arith.constant 0 : i32
    %c0_i32_1 = arith.constant 0 : i32
    return %arg0, %c0_i32, %c0_i32_0 : i32, i32, i32
  }
  func.func @transform_12(%arg0: i32) -> (i32, i32, i32) {
    %c0_i32 = arith.constant 0 : i32
    %c0_i32_0 = arith.constant 0 : i32
    %c0_i32_1 = arith.constant 0 : i32
    return %arg0, %c0_i32, %c0_i32_0 : i32, i32, i32
  }
  func.func @transform_13(%arg0: i32) -> (i32, i32) {
    %c0_i32 = arith.constant 0 : i32
    %c0_i32_0 = arith.constant 0 : i32
    %c0_i32_1 = arith.constant 0 : i32
    return %c0_i32, %c0_i32_0 : i32, i32
  }
  func.func @transform_14(%arg0: i32) -> (i32, i32) {
    %c0_i32 = arith.constant 0 : i32
    %c0_i32_0 = arith.constant 0 : i32
    %c0_i32_1 = arith.constant 0 : i32
    return %c0_i32, %c0_i32_0 : i32, i32
  }
  func.func @transform_15(%arg0: i32) -> (i32, i32) {
    %c0_i32 = arith.constant 0 : i32
    %c0_i32_0 = arith.constant 0 : i32
    %c0_i32_1 = arith.constant 0 : i32
    return %c0_i32, %c0_i32_0 : i32, i32
  }
  func.func @transform_16(%arg0: i32) -> (i32, i32) {
    %c0_i32 = arith.constant 0 : i32
    %c0_i32_0 = arith.constant 0 : i32
    %c0_i32_1 = arith.constant 0 : i32
    return %c0_i32, %c0_i32_0 : i32, i32
  }
  func.func @transform_17(%arg0: i32) -> (i32, i32) {
    %c0_i32 = arith.constant 0 : i32
    %c0_i32_0 = arith.constant 0 : i32
    %c0_i32_1 = arith.constant 0 : i32
    return %c0_i32, %c0_i32_0 : i32, i32
  }
  func.func @transform_18(%arg0: i32) -> (i32, i32) {
    %c0_i32 = arith.constant 0 : i32
    %c0_i32_0 = arith.constant 0 : i32
    %c0_i32_1 = arith.constant 0 : i32
    return %c0_i32, %c0_i32_0 : i32, i32
  }
}

</mosaic_0001>

<bundles_post_ra>
// kernel: tpu_custom_call.1
= control target key start
LH: loop header
LB: loop body
LE: loop exit
PB: predicated region body
PF: predicated region fallthrough
CT: control target
= control target key end

     0   :  { %s2825_s0 = inlined_call_operand.vmem [shape: f32[16,128], index: 0, kind: input, shape index: {}]   ;;  %s2826_s1 = inlined_call_operand.hbm [shape: f32[128,128], index: 1, kind: input, shape index: {}]   ;;  %s2827_s2 = inlined_call_operand.vmem [shape: f32[1,128], index: 2, kind: input, shape index: {}]   ;;  %s2828_s3 = inlined_call_operand.vmem [shape: bf16[32,16], index: 3, kind: input, shape index: {}]   ;;  %s2829_s4 = inlined_call_operand.vmem [shape: bf16[32,16], index: 4, kind: input, shape index: {}]   ;;  %s2830_s5 = inlined_call_operand.vmem [shape: bf16[16,32], index: 5, kind: input, shape index: {}]   ;;  %s2831_s6 = inlined_call_operand.hbm [shape: f32[3,128,128], index: 6, kind: input, shape index: {}]   ;;  %s2832_s7 = inlined_call_operand.hbm [shape: f32[3,128,128], index: 7, kind: input, shape index: {}]   ;;  %s2833_s8 = inlined_call_operand.vmem [shape: f32[3,1,128], index: 8, kind: input, shape index: {}]   ;;  %s2834_s9 = inlined_call_operand.hbm [shape: f32[3,128,128], index: 9, kind: input, shape index: {}]   ;;  %s2835_s10 = inlined_call_operand.vmem [shape: f32[3,1,128], index: 10, kind: input, shape index: {}]   ;;  %s2836_s11 = inlined_call_operand.vmem [shape: f32[3,1,128], index: 11, kind: input, shape index: {}]   ;;  %s2837_s12 = inlined_call_operand.vmem [shape: f32[3,1,128], index: 12, kind: input, shape index: {}]   ;;  %s2838_s13 = inlined_call_operand.vmem [shape: bf16[8,16], index: 13, kind: input, shape index: {}]   ;;  %s2839_s14 = inlined_call_operand.hbm [shape: f32[128,128], index: 14, kind: input, shape index: {}]   ;;  %s2840_s15 = inlined_call_operand.vmem [shape: f32[1,128], index: 15, kind: input, shape index: {}]   ;;  %s2841_s16 = inlined_call_operand.hbm [shape: f32[128,128], index: 16, kind: input, shape index: {}]   ;;  %s2842_s17 = inlined_call_operand.vmem [shape: f32[1,128], index: 17, kind: input, shape index: {}]   ;;  %s2843_s18 = inlined_call_operand.hbm [shape: f32[8,128], index: 18, kind: output, shape index: {}]  }
   0x1   :  { %2859 = sst [smem:[#allocation24_spill]] %s2825_s0 }
   0x2   :  { %2860 = sst [smem:[#allocation25_spill]] %s2826_s1 }
   0x3   :  { %2861 = sst [smem:[#allocation26_spill]] %s2827_s2 }
   0x4   :  { %2862 = sst [smem:[#allocation27_spill]] %s2828_s3 }
   0x5   :  { %2863 = sst [smem:[#allocation28_spill]] %s2830_s5 }
   0x6   :  { %2864 = sst [smem:[#allocation29_spill]] %s2831_s6 }
   0x7   :  { %2865 = sst [smem:[#allocation30_spill]] %s2838_s13 }
   0x8   :  { %2866 = sst [smem:[#allocation31_spill]] %s2839_s14 }
   0x9   :  { %2867 = sst [smem:[#allocation32_spill]] %s2840_s15 }
   0xa   :  { %2868 = sst [smem:[#allocation33_spill]] %s2841_s16 }
   0xb   :  { %2869 = sst [smem:[#allocation34_spill]] %s2842_s17 }
   0xc   :  { %2870 = sst [smem:[#allocation35_spill]] %s2843_s18 }
   0xd   :  { %23 = vsyncpa [#allocation4], 0 }
   0xe   :  { %24 = vsyncpa [#allocation7], 0 }
   0xf   :  { %26 = vsyncpa [#allocation7 + $0x1], 0 }
  0x10   :  { %27 = vsyncpa [#allocation10], 0 }
  0x11   :  { %29 = vsyncpa [#allocation10 + $0x1], 0 }
  0x12   :  { %30 = vsyncpa [#allocation13], 0 }
  0x13   :  { %31 = vsyncpa [#allocation5], 0  ;;  %s2379_s27 = smov 0   ;;  %s2381_s28 = smov 0  }
  0x14   :  { %s2383_s29 = smov 0   ;;  %s2385_s30 = smov 0  }
  0x15 LB: > { %2871 = sst [smem:[#allocation21_spill]] %s2263_s29  ;;  %s2398_s0 = sadd.s32 4294967295, %s2267_s30   ;;  %s2267_s30 = sphi %s2385_s30, %s2909_s30   ;;  %s2263_s29 = sphi %s2383_s29, %s2911_s29   ;;  %s2259_s28 = sphi %s2381_s28, %s2913_s28   ;;  %s2255_s27 = sphi %s2379_s27, %s2912_s27  }
  0x16   : > { %s2401_s19 = sadd.s32 1, %s2267_s30   ;;  %s170_s20 = sadd.s32 1, %s2263_s29 }
  0x17   : > { %2872 = sst [smem:[#allocation22_spill]] %s2401_s19  ;;  %s167_s1 = ssub.s32 %s2267_s30, %s2401_s19 }
  0x18   : > { %p168_p0 = scmp.eq.s32.totalorder %s167_s1, 0  ;;  %p177_p1 = scmp.ne.s32.totalorder %s2263_s29, %s2259_s28 }
  0x19   : > { %p178_p2 = scmp.eq.s32.totalorder %s2267_s30, 0  ;;  %p183_p3 = scmp.ne.s32.totalorder %s2259_s28, %s2255_s27 }
  0x1a   : > { %s2411_s21 = scalar_select %p168_p0, %s2263_s29, %s170_s20  }
  0x1b   : > { %p2413_p4 = por %p178_p2, %p177_p1  ;;  %p2852_p5 = scmp.eq.s32.totalorder %s2398_s0, 0 }
  0x1c   : > { %2873 = sst [smem:[#allocation23_spill]] %s2411_s21  ;;  %p1667_p6 = scmp.ge.s32.totalorder %s2267_s30, 1 }
  0x1d   : > { %p476_p7 = scmp.lt.s32.totalorder %s2267_s30, 4  ;;  %p2422_p8 = por %p2852_p5, %p183_p3 }
  0x1e   : > { %s2269_s24 = smov [#allocation11]   ;;  %p1972_p13 = scmp.lt.s32.totalorder %s2267_s30, 3 }
  0x1f   : > { %s2875_s2 = scalar_select %p2422_p8, 1, 0 }
  0x20   : > { %p2427_p10 = pnand %p1667_p6, %p476_p7  ;;  %s519_s25 = sshll.u32 %s2269_s24, 4  ;;  %s520_s25 = int_to_ptr.vmem [resolvable:$true] %s519_s25 }
  0x21   : > { %s554_s1 = sand.u32 1, %s2263_s29   ;;  %s2038_s20 = scalar_lea.vmem %s520_s25, 2048 }
  0x22   : > { %s2876_s23 = scalar_select %p2427_p10, 1, 0 }
  0x23   : > { %p1949_p11 = pneg %p2427_p10  ;;  %p2039_p1 = scmp.ne.s32.totalorder %s520_s25, %s2038_s20 }
  0x24   : > { %p2046_p6 = scmp.lt.s32.totalorder %s520_s25, %s520_s25  ;;  %p2047_p7 = scmp.lt.s32.totalorder %s2038_s20, %s2038_s20 }
  0x25   : > { %p2435_p12 = pnand %p1949_p11, %p2852_p5 }
  0x26   : > { %p2048_p9 = por %p2047_p7, %p2046_p6 }
  0x27   : > { %s2877_s26 = scalar_select %p2435_p12, 1, 0 }
  0x28   : > { %p2853_p0 = pneg %p2435_p12 }
  0x2a   : > { %p2041_p2 = pnand %p2039_p1, %p2853_p0 }
  0x2c   : > { %p2042_p3 = pneg %p2041_p2 }
  0x2e   : > { %p2049_p11 = pnand %p2048_p9, %p2042_p3 }
  0x30   : > { %2052 = shalt.err (!%p2049_p11)
}
  0x31   : > { %s2848_s24 = smov 128   ;;  %s2850_s27 = smov 8  }
  0x32   : > { %s2878_s14 = sld [smem:[#allocation31_spill]]  ;;  %s2455_s19 = sshll.u32 %s554_s1, 7 }
  0x33   : > { %s2458_s20 = sshll.u32 %s2267_s30, 11  ;;  %s2879_s6 = sld [smem:[#allocation29_spill]] }
  0x34   : > { %s556_s13 = scalar_lea.vmem [#allocation6], %s2455_s19  ;;  %p2471_p9 = pnand %p1972_p13, %p2413_p4 }
  0x35   : > { %s563_s5 = sshll.u32 %s556_s13, 4  ;;  %s2881_s21 = sand.u32 1, %s2267_s30   ;;  %s2475_s5 = int_to_ptr.vmem [resolvable:$true] %s563_s5 }
  0x36   : > { %p2485_p2 = pneg %p2471_p9 }
  0x38   : > { %1955 = dma.hbm_to_vmem [thread:$0]  (!%p2435_p12), %s2878_s14, 2048, %s520_s25, [#allocation10], %s2848_s24, %s2848_s24, %s2850_s27  }
  0x39   : > { %s2464_s15 = scalar_lea.hbm %s2879_s6, %s2458_s20  ;;  %s2479_s25 = scalar_lea.sflag [#allocation7], %s2881_s21 }
  0x3a   : > { %s2053_s17 = scalar_lea.hbm %s2464_s15, 2048  ;;  %s2058_s1 = scalar_lea.hbm %s2879_s6, 6144 }
  0x3b   : > { %p2054_p1 = scmp.ne.s32.totalorder %s2464_s15, %s2053_s17  ;;  %p2059_p13 = scmp.lt.s32.totalorder %s2464_s15, %s2879_s6 }
  0x3c   : > { %p2060_p6 = scmp.lt.s32.totalorder %s2058_s1, %s2053_s17 }
  0x3d   : > { %p2056_p3 = pnand %p2485_p2, %p2054_p1 }
  0x3e   : > { %p2061_p7 = por %p2060_p6, %p2059_p13 }
  0x3f   : > { %p2057_p4 = pneg %p2056_p3 }
  0x41   : > { %p2062_p11 = pnand %p2061_p7, %p2057_p4 }
  0x43   : > { %2065 = shalt.err (!%p2062_p11)
}
  0x44   : > { %s2066_s21 = scalar_lea.vmem %s2475_s5, 2048  ;;  %s2272_s14 = smov [#allocation6]  }
  0x45   : > { %p2067_p5 = scmp.ne.s32.totalorder %s2475_s5, %s2066_s21  ;;  %s2071_s13 = sshll.u32 %s2272_s14, 4  ;;  %s2072_s13 = int_to_ptr.vmem [resolvable:$false] %s2071_s13 }
  0x46   : > { %s2073_s22 = scalar_lea.vmem %s2072_s13, 4096  ;;  %p2074_p0 = scmp.lt.s32.totalorder %s2475_s5, %s2072_s13 }
  0x47   : > { %p2069_p1 = pnand %p2067_p5, %p2485_p2  ;;  %p2075_p8 = scmp.lt.s32.totalorder %s2073_s22, %s2066_s21 }
  0x49   : > { %p2070_p3 = pneg %p2069_p1  ;;  %p2076_p10 = por %p2075_p8, %p2074_p0 }
  0x4b   : > { %p2077_p12 = pnand %p2076_p10, %p2070_p3 }
  0x4d   : > { %2080 = shalt.err (!%p2077_p12)
}
  0x4e   : > { %s2883_s27 = smov 8   ;;  %s2884_s24 = smov 128  }
  0x4f   : > { %1962 = dma.hbm_to_vmem [thread:$0]  (!%p2471_p9), %s2464_s15, 2048, %s2475_s5, %s2479_s25, %s2884_s24, %s2884_s24, %s2883_s27  }
  0x50   : > { %s2273_s17 = smov [#allocation3]   ;;  %s2274_s14 = smov [#allocation12]  }
  0x51   : > { %s491_s1 = sshll.u32 %s2273_s17, 4  ;;  %s535_s6 = sshll.u32 %s2274_s14, 4  ;;  %s492_s1 = int_to_ptr.vmem [resolvable:$true] %s491_s1  ;;  %s536_s6 = int_to_ptr.vmem [resolvable:$true] %s535_s6 }
  0x52   : > { %s2092_s13 = scalar_lea.vmem %s492_s1, 2048  ;;  %p2885_p8 = scmp.ne.s32.totalorder %s2877_s26, 0 }
  0x53   : > { %p2093_p5 = scmp.ne.s32.totalorder %s492_s1, %s2092_s13  ;;  %p2100_p4 = scmp.lt.s32.totalorder %s492_s1, %s492_s1 }
  0x54   : > { %p2886_p10 = pneg %p2885_p8  ;;  %p2101_p13 = scmp.lt.s32.totalorder %s2092_s13, %s2092_s13 }
  0x56   : > { %p2095_p12 = pnand %p2093_p5, %p2886_p10  ;;  %p2102_p6 = por %p2101_p13, %p2100_p4 }
  0x58   : > { %p2096_p0 = pneg %p2095_p12 }
  0x5a   : > { %p2103_p7 = pnand %p2102_p6, %p2096_p0 }
  0x5c   : > { %2106 = shalt.err (!%p2103_p7)
}
  0x5d   : > { %s2887_s21 = sld [smem:[#allocation25_spill]]  ;;  %s2118_s22 = scalar_lea.vmem %s536_s6, 2048 }
  0x5e   : > { %p2119_p11 = scmp.ne.s32.totalorder %s536_s6, %s2118_s22  ;;  %p2888_p1 = pmov %p2886_p10 }
  0x5f   : > { %p2126_p10 = scmp.lt.s32.totalorder %s536_s6, %s536_s6  ;;  %p2127_p12 = scmp.lt.s32.totalorder %s2118_s22, %s2118_s22 }
  0x60   : > { %p2121_p3 = pnand %p2119_p11, %p2888_p1 }
  0x61   : > { %p2128_p0 = por %p2127_p12, %p2126_p10 }
  0x62   : > { %p2122_p5 = pneg %p2121_p3 }
  0x63   : > { %1952 = dma.hbm_to_vmem [thread:$0]  (!%p2885_p8), %s2887_s21, 2048, %s492_s1, [#allocation4], %s2884_s24, %s2884_s24, %s2883_s27  }
  0x64   : > { %p2129_p4 = pnand %p2128_p0, %p2122_p5 }
  0x66   : > { %2132 = shalt.err (!%p2129_p4)
}
  0x67   : > { %s2889_s16 = sld [smem:[#allocation33_spill]]  ;;  %s2537_s5 = scalar_lea.hbm %s2832_s7, %s2458_s20 }
  0x68   : > { %s577_s15 = scalar_lea.vmem [#allocation8], %s2455_s19  ;;  %s2133_s21 = scalar_lea.hbm %s2537_s5, 2048 }
  0x69   : > { %s584_s26 = sshll.u32 %s577_s15, 4  ;;  %p2134_p13 = scmp.ne.s32.totalorder %s2537_s5, %s2133_s21  ;;  %s585_s26 = int_to_ptr.vmem [resolvable:$true] %s584_s26 }
  0x6b   : > { %p2136_p6 = pnand %p2134_p13, %p2485_p2 }
  0x6d   : > { %1958 = dma.hbm_to_vmem [thread:$0]  (!%p2885_p8), %s2889_s16, 2048, %s536_s6, [#allocation13], %s2884_s24, %s2884_s24, %s2883_s27  }
  0x6e   : > { %p2137_p7 = pneg %p2136_p6  ;;  %s2138_s6 = scalar_lea.hbm %s2832_s7, 6144 }
  0x6f   : > { %p2139_p8 = scmp.lt.s32.totalorder %s2537_s5, %s2832_s7  ;;  %p2140_p11 = scmp.lt.s32.totalorder %s2138_s6, %s2133_s21 }
  0x71   : > { %p2141_p1 = por %p2140_p11, %p2139_p8 }
  0x73   : > { %p2142_p3 = pnand %p2141_p1, %p2137_p7 }
  0x75   : > { %2145 = shalt.err (!%p2142_p3)
}
  0x76   : > { %s2146_s1 = scalar_lea.vmem %s585_s26, 2048  ;;  %s2275_s13 = smov [#allocation8]  }
  0x77   : > { %p2147_p5 = scmp.ne.s32.totalorder %s585_s26, %s2146_s1  ;;  %s2151_s15 = sshll.u32 %s2275_s13, 4  ;;  %s2152_s15 = int_to_ptr.vmem [resolvable:$false] %s2151_s15 }
  0x78   : > { %s2153_s3 = scalar_lea.vmem %s2152_s15, 4096  ;;  %p2154_p0 = scmp.lt.s32.totalorder %s585_s26, %s2152_s15 }
  0x79   : > { %p2149_p10 = pnand %p2147_p5, %p2485_p2  ;;  %p2155_p4 = scmp.lt.s32.totalorder %s2153_s3, %s2146_s1 }
  0x7b   : > { %p2150_p12 = pneg %p2149_p10  ;;  %p2156_p13 = por %p2155_p4, %p2154_p0 }
  0x7d   : > { %p2157_p6 = pnand %p2156_p13, %p2150_p12 }
  0x7f   : > { %2160 = shalt.err (!%p2157_p6)
}
  0x80   : > { %1965 = dma.hbm_to_vmem [thread:$0]  (!%p2471_p9), %s2537_s5, 2048, %s585_s26, %s2479_s25, %s2884_s24, %s2884_s24, %s2883_s27  }
  0x81   : > { %s2564_s22 = scalar_lea.hbm %s2834_s9, %s2458_s20  ;;  %s604_s3 = scalar_lea.vmem [#allocation9], %s2455_s19 }
  0x82   : > { %s611_s17 = sshll.u32 %s604_s3, 4  ;;  %s2890_s6 = sand.u32 1, %s2267_s30   ;;  %s2567_s17 = int_to_ptr.vmem [resolvable:$true] %s611_s17 }
  0x83   : > { %s601_s14 = scalar_lea.sflag [#allocation10], %s2890_s6  ;;  %s2161_s1 = scalar_lea.hbm %s2564_s22, 2048 }
  0x84   : > { %p2162_p7 = scmp.ne.s32.totalorder %s2564_s22, %s2161_s1  ;;  %s2166_s26 = scalar_lea.hbm %s2834_s9, 6144 }
  0x85   : > { %p2167_p1 = scmp.lt.s32.totalorder %s2564_s22, %s2834_s9  ;;  %p2168_p3 = scmp.lt.s32.totalorder %s2166_s26, %s2161_s1 }
  0x86   : > { %p2164_p8 = pnand %p2162_p7, %p2485_p2 }
  0x87   : > { %p2169_p5 = por %p2168_p3, %p2167_p1 }
  0x88   : > { %p2165_p11 = pneg %p2164_p8 }
  0x8a   : > { %p2170_p10 = pnand %p2169_p5, %p2165_p11 }
  0x8c   : > { %2173 = shalt.err (!%p2170_p10)
}
  0x8d   : > { %s2174_s30 = scalar_lea.vmem %s2567_s17, 2048  ;;  %s2276_s19 = smov [#allocation9]  }
  0x8e   : > { %p2175_p12 = scmp.ne.s32.totalorder %s2567_s17, %s2174_s30  ;;  %s2179_s15 = sshll.u32 %s2276_s19, 4  ;;  %s2180_s15 = int_to_ptr.vmem [resolvable:$false] %s2179_s15 }
  0x8f   : > { %s2181_s16 = scalar_lea.vmem %s2180_s15, 4096  ;;  %p2182_p13 = scmp.lt.s32.totalorder %s2567_s17, %s2180_s15 }
  0x90   : > { %p2177_p0 = pnand %p2175_p12, %p2485_p2  ;;  %p2183_p6 = scmp.lt.s32.totalorder %s2181_s16, %s2174_s30 }
  0x92   : > { %p2178_p4 = pneg %p2177_p0  ;;  %p2184_p7 = por %p2183_p6, %p2182_p13 }
  0x94   : > { %p2185_p8 = pnand %p2184_p7, %p2178_p4 }
  0x96   : > { %2188 = shalt.err (!%p2185_p8)
}
  0x97   : > { %1968 = dma.hbm_to_vmem [thread:$0]  (!%p2471_p9), %s2564_s22, 2048, %s2567_s17, %s601_s14, %s2884_s24, %s2884_s24, %s2883_s27  }
  0x98   : > { %p2891_p2 = scmp.ne.s32.totalorder %s2876_s23, 0 }
  0x99   : > { %p2892_p11 = scmp.eq.s32.totalorder (!%p2891_p2), %s2398_s0, 0 }
  0x9a   : > { %641 = sbr.rel (%p2891_p2) target bundleno = 1910 (0x776), region = 92 }
  0x9f   : > { %2230 = dma.done.wait (%p2892_p11), [#allocation4], 2048   ;;  %p2893_p1 = pmov %p2892_p11 }
  0xa0   : > { %s647_s18 = sand.u32 1, %s2398_s0   ;;  %s649_s29 = sand.u32 1, %s2259_s28  }
  0xa1   : > { %2232 = vsyncadd (%p2893_p1), [#allocation4], 4294965248  ;;  %s1683_s21 = sshll.u32 %s649_s29, 7  ;;  %s648_s3 = scalar_lea.sflag [#allocation7], %s647_s18 }
  0xa2   : > { %s2602_s6 = scalar_lea.vmem [#allocation6], %s1683_s21  ;;  %p2894_p3 = scmp.ne.s32.totalorder %s2875_s2, 0 }
  0xa4   : > { %2234 = dma.done.wait (%p2894_p3), %s648_s3, 4096  }
  0xa5   : > { %2236 = vsyncadd (%p2894_p3), %s648_s3, 4294963200  ;;  %s2608_s23 = scalar_lea.vmem [#allocation8], %s1683_s21  ;;  %s666_s27 = scalar_lea.sflag [#allocation10], %s647_s18 }
  0xa6   : > { %s2610_s24 = scalar_lea.vmem [#allocation9], %s1683_s21 }
  0xa7   : > { %2238 = dma.done.wait (%p2894_p3), %s666_s27, 2048  }
  0xa8   : > { %2240 = vsyncadd (%p2894_p3), %s666_s27, 4294965248  ;;  %p2895_p9 = pmov %p2893_p1 }
  0xa9   : > { %p2896_p5 = pmov %p2893_p1 }
  0xaa   : > { %2242 = dma.done.wait (%p2895_p9), [#allocation10], 2048  }
  0xab   : > { %2244 = vsyncadd (%p2896_p5), [#allocation10], 4294965248  ;;  %p2897_p10 = pmov %p2893_p1 }
  0xac   : > { %p2898_p12 = pmov %p2893_p1 }
  0xad   : > { %2246 = dma.done.wait (%p2897_p10), [#allocation13], 2048  }
  0xae   : > { %2248 = vsyncadd (%p2898_p12), [#allocation13], 4294965248  ;;  %p747_p0 = scmp.lt.s32.totalorder %s2398_s0, 2  ;;  %p2899_p4 = scmp.ne.s32.totalorder %s2398_s0, 0 }
  0xaf   : > { %s2900_s29 = sld [smem:[#allocation24_spill]] (!%p2899_p4) }
  0xb0   : > { %s2626_s22 = scalar_select %p747_p0, %s2398_s0, 2 }
  0xb1   : > { %763 = sbr.rel (%p2899_p4) target bundleno = 416 (0x1a0), region = 120  ;;  %s2902_s1 = sld [smem:[#allocation26_spill]] (!%p2899_p4) }
  0xb2   : > { %s749_s14 = scalar_lea.vmem %s2833_s8, %s2626_s22  ;;  %s752_s5 = scalar_lea.vmem %s2835_s10, %s2626_s22 }
  0xb3   : > { %s755_s13 = scalar_lea.vmem %s2836_s11, %s2626_s22  ;;  %s758_s15 = scalar_lea.vmem %s2837_s12, %s2626_s22 }
  0xb5   : > { %s2901_s21 = smov (!%p2899_p4), %s2900_s29 }
  0xb6   : > { %v780_v0 = vld [vmem:[#allocation3 + $0x70] sm:$0xff]  ;;  %v781_v1 = vld [vmem:[#allocation3 + $0x78] sm:$0xff]  ;;  %v778_v2 = vld [vmem:[#allocation3 + $0x60] sm:$0xff]  ;;  %v2277_v3 = vmov 0.0   ;;  %vm2278_vm0 = vmmov 0  }
  0xb7   : > { %1781 = vmatprep.subr.bf16.mxu0 %v2277_v3  ;;  %v790_v4 = vpack.c.bf16 %v781_v1, %v780_v0  ;;  %v779_v5 = vld [vmem:[#allocation3 + $0x68] sm:$0xff]  ;;  %1797 = vmatprep.mubr.msk.bf16.mxu0 %vm2278_vm0, %v2277_v3  ;;  %v776_v7 = vld [vmem:[#allocation3 + $0x50] sm:$0xff]  ;;  %v777_v8 = vld [vmem:[#allocation3 + $0x58] sm:$0xff] }
  0xb8   : > { %v789_v6 = vpack.c.bf16 %v779_v5, %v778_v2  ;;  %v788_v9 = vpack.c.bf16 %v777_v8, %v776_v7  ;;  %v774_v10 = vld [vmem:[#allocation3 + $0x40] sm:$0xff]  ;;  %v775_v11 = vld [vmem:[#allocation3 + $0x48] sm:$0xff]  ;;  %v772_v13 = vld [vmem:[#allocation3 + $0x30] sm:$0xff] }
  0xb9   : > { %1782 = vmatpush3.bf16.msra.mxu0 %v790_v4  ;;  %v787_v12 = vpack.c.bf16 %v775_v11, %v774_v10  ;;  %v773_v14 = vld [vmem:[#allocation3 + $0x38] sm:$0xff]  ;;  %v770_v16 = vld [vmem:[#allocation3 + $0x20] sm:$0xff]  ;;  %v771_v17 = vld [vmem:[#allocation3 + $0x28] sm:$0xff] }
  0xba   : > { %1783 = vmatprep.subr.bf16.mxu0 %v2277_v3  ;;  %v786_v15 = vpack.c.bf16 %v773_v14, %v772_v13  ;;  %v785_v18 = vpack.c.bf16 %v771_v17, %v770_v16  ;;  %v768_v19 = vld [vmem:[#allocation3 + $0x10] sm:$0xff]  ;;  %v769_v20 = vld [vmem:[#allocation3 + $0x18] sm:$0xff]  ;;  %v766_v22 = vld [vmem:[#allocation3] sm:$0xff] }
  0xbb   : > { %v784_v21 = vpack.c.bf16 %v769_v20, %v768_v19  ;;  %v767_v23 = vld [vmem:[#allocation3 + $0x8] sm:$0xff]  ;;  %v764_v25 = vld [vmem:[%s2900_s29] sm:$0xff]  ;;  %v765_v26 = vld [vmem:[%s2901_s21 + $0x8] sm:$0xff] }
  0xbc   : > { %v783_v24 = vpack.c.bf16 %v767_v23, %v766_v22  ;;  %v782_v27 = vpack.c.bf16 %v765_v26, %v764_v25  ;;  %v1689_v28 = vld [vmem:[%s2902_s1] ss:$0 sm:$0xff] }
  0xbd   : > { %1784 = vmatpush3.bf16.msra.mxu0 %v789_v6 }
  0xbe   : > { %1785 = vmatprep.subr.bf16.mxu0 %v2277_v3 }
  0xc1   : > { %1786 = vmatpush3.bf16.msra.mxu0 %v788_v9 }
  0xc2   : > { %1787 = vmatprep.subr.bf16.mxu0 %v2277_v3 }
  0xc5   : > { %1788 = vmatpush3.bf16.msra.mxu0 %v787_v12 }
  0xc6   : > { %1789 = vmatprep.subr.bf16.mxu0 %v2277_v3 }
  0xc9   : > { %1790 = vmatpush3.bf16.msra.mxu0 %v786_v15 }
  0xca   : > { %1791 = vmatprep.subr.bf16.mxu0 %v2277_v3 }
  0xcd   : > { %1792 = vmatpush3.bf16.msra.mxu0 %v785_v18 }
  0xce   : > { %1793 = vmatprep.subr.bf16.mxu0 %v2277_v3 }
  0xd1   : > { %1794 = vmatpush3.bf16.msra.mxu0 %v784_v21 }
  0xd2   : > { %1795 = vmatprep.subr.bf16.mxu0 %v2277_v3 }
  0xd5   : > { %1796 = vmatpush3.bf16.msra.mxu0 %v783_v24 }
  0xd8   : > { %1798 = vmatmul.mubr.bf16.vlgmr.msra.gmra.mxu0 %v782_v27 }
 0x198   : > { %v832_v29 = vpop.f32.mrf.mxu0 }
 0x199   : > { %v833_v30 = vadd.f32 %v1689_v28, %v832_v29 }
 0x19a   : > { %v1799_v31 = vpop.f32.mrf.mxu0 }
 0x19b   : > { %839 = vst [vmem:[#allocation2] sm:$0xff] %v833_v30 }
 0x19c   : > { %v835_v32 = vpop.f32.mrf.mxu0 }
 0x19d   : > { %v836_v33 = vadd.f32 %v1689_v28, %v835_v32 }
 0x19e   : > { %v1800_v34 = vpop.f32.mrf.mxu0 }
 0x19f   : > { %840 = vst [vmem:[#allocation2 + $0x8] sm:$0xff] %v836_v33 }
 0x1a0 PF: > { %v923_v35 = vld [vmem:[%s2608_s23 + $0x70] sm:$0xff]  ;;  %v924_v36 = vld [vmem:[%s2608_s23 + $0x78] sm:$0xff]  ;;  %v2279_v38 = vmov 0.0   ;;  %v921_v41 = vld [vmem:[%s2608_s23 + $0x60] sm:$0xff]  ;;  %vm2280_vm1 = vmmov 0   ;;  %vm994_vm2 = vcmask 130048  }
 0x1a1   : > { %v857_v37 = vld [vmem:[%s2602_s6 + $0x70] sm:$0xff]  ;;  %1821 = vmatprep.subr.bf16.mxu1 %v2279_v38  ;;  %v932_v39 = vpack.c.bf16 %v924_v36, %v923_v35  ;;  %1801 = vmatprep.subr.bf16.mxu0 %v2279_v38  ;;  %v858_v40 = vld [vmem:[%s2602_s6 + $0x78] sm:$0xff]  ;;  %v922_v42 = vld [vmem:[%s2608_s23 + $0x68] sm:$0xff]  ;;  %s2903_s19 = sld [smem:[#allocation27_spill]]  ;;  %vm1229_vm7 = vcmask 261120   ;;  %p1704_p13 = scmp.ne.s32.totalorder %s2398_s0, 2 }
 0x1a2   : > { %v867_v43 = vpack.c.bf16 %v858_v40, %v857_v37  ;;  %v855_v44 = vld [vmem:[%s2602_s6 + $0x60] sm:$0xff]  ;;  %v856_v45 = vld [vmem:[%s2602_s6 + $0x68] sm:$0xff]  ;;  %1837 = vmatprep.mubr.msk.bf16.mxu1 %vm2280_vm1, %v2279_v38  ;;  %1817 = vmatprep.mubr.msk.bf16.mxu0 %vm2280_vm1, %v2279_v38  ;;  %v931_v46 = vpack.c.bf16 %v922_v42, %v921_v41  ;;  %v919_v48 = vld [vmem:[%s2608_s23 + $0x50] sm:$0xff]  ;;  %s2904_s17 = sld [smem:[#allocation28_spill]] }
 0x1a3   : > { %1822 = vmatpush3.bf16.msra.mxu1 %v932_v39  ;;  %v866_v47 = vpack.c.bf16 %v856_v45, %v855_v44  ;;  %v920_v49 = vld [vmem:[%s2608_s23 + $0x58] sm:$0xff]  ;;  %v853_v50 = vld [vmem:[%s2602_s6 + $0x50] sm:$0xff]  ;;  %v917_v54 = vld [vmem:[%s2608_s23 + $0x40] sm:$0xff]  ;;  %s2906_s20 = sld [smem:[#allocation32_spill]] (!%p1704_p13) }
 0x1a4   : > { %1802 = vmatpush3.bf16.msra.mxu0 %v867_v43  ;;  %1823 = vmatprep.subr.bf16.mxu1 %v2279_v38  ;;  %v854_v51 = vld [vmem:[%s2602_s6 + $0x58] sm:$0xff]  ;;  %v930_v52 = vpack.c.bf16 %v920_v49, %v919_v48  ;;  %v918_v55 = vld [vmem:[%s2608_s23 + $0x48] sm:$0xff]  ;;  %v851_v56 = vld [vmem:[%s2602_s6 + $0x40] sm:$0xff]  ;;  %s2907_s18 = sld [smem:[#allocation34_spill]] (!%p1704_p13) }
 0x1a5   : > { %1803 = vmatprep.subr.bf16.mxu0 %v2279_v38  ;;  %v865_v53 = vpack.c.bf16 %v854_v51, %v853_v50  ;;  %v852_v57 = vld [vmem:[%s2602_s6 + $0x48] sm:$0xff]  ;;  %v915_v58 = vld [vmem:[%s2608_s23 + $0x30] sm:$0xff]  ;;  %v916_v59 = vld [vmem:[%s2608_s23 + $0x38] sm:$0xff]  ;;  %v929_v60 = vpack.c.bf16 %v918_v55, %v917_v54 }
 0x1a6   : > { %v849_v61 = vld [vmem:[%s2602_s6 + $0x30] sm:$0xff]  ;;  %v850_v62 = vld [vmem:[%s2602_s6 + $0x38] sm:$0xff]  ;;  %v864_v63 = vpack.c.bf16 %v852_v57, %v851_v56  ;;  %v928_v0 = vpack.c.bf16 %v916_v59, %v915_v58  ;;  %v913_v2 = vld [vmem:[%s2608_s23 + $0x20] sm:$0xff] }
 0x1a7   : > { %1824 = vmatpush3.bf16.msra.mxu1 %v931_v46  ;;  %v863_v1 = vpack.c.bf16 %v850_v62, %v849_v61  ;;  %v914_v3 = vld [vmem:[%s2608_s23 + $0x28] sm:$0xff]  ;;  %v847_v4 = vld [vmem:[%s2602_s6 + $0x20] sm:$0xff]  ;;  %v911_v8 = vld [vmem:[%s2608_s23 + $0x10] sm:$0xff] }
 0x1a8   : > { %1804 = vmatpush3.bf16.msra.mxu0 %v866_v47  ;;  %1825 = vmatprep.subr.bf16.mxu1 %v2279_v38  ;;  %v848_v5 = vld [vmem:[%s2602_s6 + $0x28] sm:$0xff]  ;;  %v927_v6 = vpack.c.bf16 %v914_v3, %v913_v2  ;;  %v912_v9 = vld [vmem:[%s2608_s23 + $0x18] sm:$0xff]  ;;  %v845_v10 = vld [vmem:[%s2602_s6 + $0x10] sm:$0xff] }
 0x1a9   : > { %1805 = vmatprep.subr.bf16.mxu0 %v2279_v38  ;;  %v862_v7 = vpack.c.bf16 %v848_v5, %v847_v4  ;;  %v846_v11 = vld [vmem:[%s2602_s6 + $0x18] sm:$0xff]  ;;  %v926_v12 = vpack.c.bf16 %v912_v9, %v911_v8  ;;  %v909_v14 = vld [vmem:[%s2608_s23] sm:$0xff]  ;;  %v910_v15 = vld [vmem:[%s2608_s23 + $0x8] sm:$0xff] }
 0x1aa   : > { %v861_v13 = vpack.c.bf16 %v846_v11, %v845_v10  ;;  %v843_v16 = vld [vmem:[%s2602_s6] sm:$0xff]  ;;  %v844_v17 = vld [vmem:[%s2602_s6 + $0x8] sm:$0xff]  ;;  %v925_v18 = vpack.c.bf16 %v910_v15, %v909_v14  ;;  %v841_v19 = vld [vmem:[#allocation2] sm:$0xff] }
 0x1ab   : > { %1826 = vmatpush3.bf16.msra.mxu1 %v930_v52  ;;  %v842_v20 = vld [vmem:[#allocation2 + $0x8] sm:$0xff]  ;;  %v860_v21 = vpack.c.bf16 %v844_v17, %v843_v16  ;;  %v2022_v23 = vld [vmem:[%s2829_s4] sm:$0xff]   ;;  %v1150_v26 = vld [vmem:[%s2610_s24 + $0x60] sm:$0xff] }
 0x1ac   : > { %1806 = vmatpush3.bf16.msra.mxu0 %v865_v53  ;;  %1827 = vmatprep.subr.bf16.mxu1 %v2279_v38  ;;  %v859_v22 = vpack.c.bf16 %v842_v20, %v841_v19  ;;  %v1152_v24 = vld [vmem:[%s2610_s24 + $0x70] sm:$0xff]  ;;  %v1153_v25 = vld [vmem:[%s2610_s24 + $0x78] sm:$0xff]  ;;  %v1151_v28 = vld [vmem:[%s2610_s24 + $0x68] sm:$0xff] }
 0x1ad   : > { %1807 = vmatprep.subr.bf16.mxu0 %v2279_v38  ;;  %v1163_v27 = vpack.c.bf16 %v1153_v25, %v1152_v24  ;;  %v1162_v29 = vpack.c.bf16 %v1151_v28, %v1150_v26  ;;  %v2023_v41 = vld [vmem:[%s2829_s4 + $0x8] sm:$0xff]   ;;  %v2024_v42 = vld [vmem:[%s2903_s19] sm:$0xff]   ;;  %v1146_v47 = vld [vmem:[%s2610_s24 + $0x40] sm:$0xff] }
 0x1ae   : > { %v2025_v43 = vld [vmem:[%s2903_s19 + $0x8] sm:$0xff]   ;;  %v1148_v44 = vld [vmem:[%s2610_s24 + $0x50] sm:$0xff]  ;;  %v1147_v48 = vld [vmem:[%s2610_s24 + $0x48] sm:$0xff] }
 0x1af   : > { %1828 = vmatpush3.bf16.msra.mxu1 %v929_v60  ;;  %v1149_v45 = vld [vmem:[%s2610_s24 + $0x58] sm:$0xff]  ;;  %v1160_v49 = vpack.c.bf16 %v1147_v48, %v1146_v47  ;;  %v1144_v50 = vld [vmem:[%s2610_s24 + $0x30] sm:$0xff]  ;;  %v1142_v53 = vld [vmem:[%s2610_s24 + $0x20] sm:$0xff] }
 0x1b0   : > { %1808 = vmatpush3.bf16.msra.mxu0 %v864_v63  ;;  %1829 = vmatprep.subr.bf16.mxu1 %v2279_v38  ;;  %v1161_v46 = vpack.c.bf16 %v1149_v45, %v1148_v44  ;;  %v1145_v51 = vld [vmem:[%s2610_s24 + $0x38] sm:$0xff]  ;;  %v1143_v54 = vld [vmem:[%s2610_s24 + $0x28] sm:$0xff]  ;;  %v1140_v56 = vld [vmem:[%s2610_s24 + $0x10] sm:$0xff] }
 0x1b1   : > { %1809 = vmatprep.subr.bf16.mxu0 %v2279_v38  ;;  %v1159_v52 = vpack.c.bf16 %v1145_v51, %v1144_v50  ;;  %v1158_v55 = vpack.c.bf16 %v1143_v54, %v1142_v53  ;;  %v1141_v57 = vld [vmem:[%s2610_s24 + $0x18] sm:$0xff]  ;;  %v1138_v59 = vld [vmem:[%s2610_s24] sm:$0xff]  ;;  %v1139_v60 = vld [vmem:[%s2610_s24 + $0x8] sm:$0xff] }
 0x1b2   : > { %v1157_v58 = vpack.c.bf16 %v1141_v57, %v1140_v56  ;;  %v1156_v61 = vpack.c.bf16 %v1139_v60, %v1138_v59  ;;  %v1699_v26 = vld [vmem:[%s752_s5] ss:$0 sm:$0xff] }
 0x1b3   : > { %1830 = vmatpush3.bf16.msra.mxu1 %v928_v0 }
 0x1b4   : > { %1810 = vmatpush3.bf16.msra.mxu0 %v863_v1  ;;  %1831 = vmatprep.subr.bf16.mxu1 %v2279_v38 }
 0x1b5   : > { %1811 = vmatprep.subr.bf16.mxu0 %v2279_v38 }
 0x1b7   : > { %1832 = vmatpush3.bf16.msra.mxu1 %v927_v6  ;;  %v1698_v6 = vld [vmem:[%s749_s14] ss:$0 sm:$0xff] }
 0x1b8   : > { %1812 = vmatpush3.bf16.msra.mxu0 %v862_v7  ;;  %1833 = vmatprep.subr.bf16.mxu1 %v2279_v38 }
 0x1b9   : > { %1813 = vmatprep.subr.bf16.mxu0 %v2279_v38 }
 0x1bb   : > { %1834 = vmatpush3.bf16.msra.mxu1 %v926_v12 }
 0x1bc   : > { %1814 = vmatpush3.bf16.msra.mxu0 %v861_v13  ;;  %1835 = vmatprep.subr.bf16.mxu1 %v2279_v38 }
 0x1bd   : > { %1815 = vmatprep.subr.bf16.mxu0 %v2279_v38 }
 0x1bf   : > { %1836 = vmatpush3.bf16.msra.mxu1 %v925_v18 }
 0x1c0   : > { %1816 = vmatpush3.bf16.msra.mxu0 %v860_v21 }
 0x1c1   : > { %1853 = vmatprep.subr.bf16.mxu0 %v1163_v27 }
 0x1c2   : > { %1838 = vmatmul.mubr.bf16.vlgmr.msra.gmra.mxu1 %v859_v22 }
 0x1c3   : > { %1818 = vmatmul.mubr.bf16.vlgmr.msra.gmra.mxu0 %v859_v22  ;;  %1843 = vmatprep.mubr.msk.bf16.mxu1 %vm994_vm2, %v2022_v23 }
 0x1c4   : > { %1854 = vmatpush3.bf16.msra.mxu0 %v1163_v27 }
 0x1c5   : > { %1855 = vmatprep.subr.bf16.mxu0 %v1162_v29 }
 0x1c8   : > { %1856 = vmatpush3.bf16.msra.mxu0 %v1162_v29 }
 0x1c9   : > { %1857 = vmatprep.subr.bf16.mxu0 %v1161_v46 }
 0x1cc   : > { %1858 = vmatpush3.bf16.msra.mxu0 %v1161_v46 }
 0x1cd   : > { %1859 = vmatprep.subr.bf16.mxu0 %v1160_v49 }
 0x1d0   : > { %1860 = vmatpush3.bf16.msra.mxu0 %v1160_v49 }
 0x1d1   : > { %1861 = vmatprep.subr.bf16.mxu0 %v1159_v52 }
 0x1d4   : > { %1862 = vmatpush3.bf16.msra.mxu0 %v1159_v52 }
 0x1d5   : > { %1863 = vmatprep.subr.bf16.mxu0 %v1158_v55 }
 0x1d8   : > { %1864 = vmatpush3.bf16.msra.mxu0 %v1158_v55 }
 0x1d9   : > { %1865 = vmatprep.subr.bf16.mxu0 %v1157_v58 }
 0x1dc   : > { %1866 = vmatpush3.bf16.msra.mxu0 %v1157_v58 }
 0x1dd   : > { %1867 = vmatprep.subr.bf16.mxu0 %v1156_v61 }
 0x1e0   : > { %1868 = vmatpush3.bf16.msra.mxu0 %v1156_v61 }
 0x282   : > { %v967_v30 = vpop.f32.mrf.mxu1 }
 0x283   : > { %v902_v31 = vpop.f32.mrf.mxu0 }
 0x284   : > { %v1839_v32 = vpop.f32.mrf.mxu1 }
 0x285   : > { %v1819_v33 = vpop.f32.mrf.mxu0 }
 0x286   : > { %v970_v34 = vpop.f32.mrf.mxu1 }
 0x287   : > { %v983_v35 = vpack.c.bf16 %v970_v34, %v967_v30  ;;  %v905_v36 = vpop.f32.mrf.mxu0 }
 0x288   : > { %v978_v37 = vpack.c.bf16 %v905_v36, %v902_v31  ;;  %v1840_v39 = vpop.f32.mrf.mxu1  ;;  %v2026_v36 = vld [vmem:[%s2904_s17] sm:$0xff]  }
 0x289   : > { %1841 = vmatprep.subr.bf16.mxu1 %v983_v35  ;;  %v1820_v40 = vpop.f32.mrf.mxu0 }
 0x28a   : > { %1842 = vmatpush3.bf16.msra.mxu1 %v983_v35  ;;  %v1703_v40 = vld [vmem:[%s758_s15] ss:$0 sm:$0xff]  ;;  %s2905_s15 = sld [smem:[#allocation30_spill]] (!%p1704_p13) }
 0x28b   : > { %1847 = vmatprep.subr.bf16.mxu1 %v978_v37 }
 0x28d   : > { %1844 = vmatmul.mubr.msk.bf16.vlgmr.msra.gmra.mxu1 %vm994_vm2, %v2023_v41 }
 0x28e   : > { %1848 = vmatpush3.bf16.msra.mxu1 %v978_v37  ;;  %1849 = vmatprep.mubr.msk.bf16.mxu1 %vm994_vm2, %v2024_v42  ;;  %v1702_v37 = vld [vmem:[%s755_s13] ss:$0 sm:$0xff] }
 0x28f   : > { %1873 = vmatprep.subr.bf16.mxu1 %v2279_v38 }
 0x295   : > { %1850 = vmatmul.mubr.msk.bf16.vlgmr.msra.gmra.mxu1 %vm994_vm2, %v2025_v43 }
 0x296   : > { %1877 = vmatprep.mubr.msk.bf16.mxu1 %vm2280_vm1, %v2279_v38 }
 0x34d   : > { %v1845_v62 = vpop.f32.mrf.mxu1 }
 0x34f   : > { %v1035_v63 = vpop.f32.mrf.mxu1 }
 0x351   : > { %v1846_v0 = vpop.f32.mrf.mxu1 }
 0x353   : > { %v1038_v1 = vpop.f32.mrf.mxu1 }
 0x355   : > { %v1851_v2 = vpop.f32.mrf.mxu1 }
 0x356   : > { %v1109_v4 = vadd.f32 %v1851_v2, %v1845_v62 }
 0x357   : > { %v1100_v3 = vpop.f32.mrf.mxu1 }
 0x358   : > { %v1101_v5 = vadd.f32 %v1100_v3, %v1035_v63  ;;  %v1124_v11 = vadd.f32 %v1698_v6, %v1109_v4 }
 0x359   : > { %v1852_v7 = vpop.f32.mrf.mxu1 }
 0x35a   : > { %v1112_v8 = vadd.f32 %v1852_v7, %v1846_v0  ;;  %v1122_v9 = vadd.f32 %v1698_v6, %v1101_v5  ;;  %v1132_v17 = vmul.f32 0.01, %v1124_v11  ;;  %vm1128_vm5 = vcmp.gt.f32.partialorder %v1124_v11, 0.0 }
 0x35b   : > { %v1103_v10 = vpop.f32.mrf.mxu1 }
 0x35c   : > { %v1125_v12 = vadd.f32 %v1698_v6, %v1112_v8  ;;  %v1104_v13 = vadd.f32 %v1103_v10, %v1038_v1  ;;  %v1130_v15 = vmul.f32 0.01, %v1122_v9  ;;  %vm1126_vm4 = vcmp.gt.f32.partialorder %v1122_v9, 0.0 }
 0x35d   : > { %v1136_v22 = vsel %vm1128_vm5, %v1124_v11, %v1132_v17 }
 0x35e   : > { %v1133_v14 = vmul.f32 0.01, %v1125_v12  ;;  %vm1129_vm3 = vcmp.gt.f32.partialorder %v1125_v12, 0.0  ;;  %v1123_v16 = vadd.f32 %v1698_v6, %v1104_v13  ;;  %v1134_v20 = vsel %vm1126_vm4, %v1122_v9, %v1130_v15 }
 0x360   : > { %vm1127_vm6 = vcmp.gt.f32.partialorder %v1123_v16, 0.0  ;;  %v1131_v18 = vmul.f32 0.01, %v1123_v16  ;;  %v1137_v19 = vsel %vm1129_vm3, %v1125_v12, %v1133_v14 }
 0x361   : > { %v1155_v24 = vpack.c.bf16 %v1137_v19, %v1136_v22 }
 0x362   : > { %v1135_v21 = vsel %vm1127_vm6, %v1123_v16, %v1131_v18 }
 0x363   : > { %v1154_v23 = vpack.c.bf16 %v1135_v21, %v1134_v20 }
 0x365   : > { %1869 = vmatprep.mubr.bf16.mxu0 %v1154_v23 }
 0x366   : > { %1870 = vmatmul.mubr.bf16.vlgmr.msra.gmra.mxu0 %v1155_v24 }
 0x426   : > { %v1871_v25 = vpop.f32.mrf.mxu0 }
 0x427   : > { %v1214_v29 = vadd.f32 %v1871_v25, %v1699_v26 }
 0x428   : > { %v1205_v27 = vpop.f32.mrf.mxu0 }
 0x429   : > { %v1206_v34 = vadd.f32 %v1699_v26, %v1205_v27 }
 0x42a   : > { %v1872_v28 = vpop.f32.mrf.mxu0 }
 0x42b   : > { %v1217_v30 = vadd.f32 %v1872_v28, %v1699_v26 }
 0x42c   : > { %v1208_v31 = vpop.f32.mrf.mxu0 }
 0x42d   : > { %v1223_v32 = vpack.c.bf16 %v1217_v30, %v1214_v29  ;;  %v1209_v33 = vadd.f32 %v1699_v26, %v1208_v31 }
 0x42f   : > { %1874 = vmatpush3.bf16.msra.mxu1 %v1223_v32  ;;  %v1222_v35 = vpack.c.bf16 %v1209_v33, %v1206_v34 }
 0x430   : > { %1875 = vmatprep.subr.bf16.mxu1 %v2279_v38 }
 0x433   : > { %1876 = vmatpush3.bf16.msra.mxu1 %v1222_v35 }
 0x436   : > { %1878 = vmatmul.mubr.msk.bf16.vlgmr.msra.gmra.mxu1 %vm1229_vm7, %v2026_v36 }
 0x4f6   : > { %v1267_v39 = vpop.f32.mrf.mxu1 }
 0x4f7   : > { %v1281_v38 = vmul.f32 %v1702_v37, %v1267_v39 }
 0x4f8   : > { %v1879_v41 = vpop.f32.mrf.mxu1 }
 0x4f9   : > { %v1290_v42 = vadd.f32 %v1703_v40, %v1281_v38 }
 0x4fa   : > { %v1270_v43 = vpop.f32.mrf.mxu1 }
 0x4fb   : > { %vm1292_vm8 = vcmp.gt.f32.partialorder %v1290_v42, 0.0  ;;  %v1294_v44 = vmul.f32 0.01, %v1290_v42  ;;  %v1282_v45 = vmul.f32 %v1702_v37, %v1270_v43 }
 0x4fc   : > { %v1880_v46 = vpop.f32.mrf.mxu1 }
 0x4fd   : > { %v1296_v47 = vsel %vm1292_vm8, %v1290_v42, %v1294_v44  ;;  %v1291_v48 = vadd.f32 %v1703_v40, %v1282_v45 }
 0x4fe   : > { %1298 = vst [vmem:[#allocation2] sm:$0xff] %v1296_v47  ;;  %1303 = sbr.rel (%p1704_p13) target bundleno = 1889 (0x761), region = 124 }
 0x4ff   : > { %vm1293_vm9 = vcmp.gt.f32.partialorder %v1291_v48, 0.0  ;;  %v1295_v49 = vmul.f32 0.01, %v1291_v48 }
 0x501   : > { %v1297_v50 = vsel %vm1293_vm9, %v1291_v48, %v1295_v49 }
 0x502   : > { %1299 = vst [vmem:[#allocation2 + $0x8] sm:$0xff] %v1297_v50 }
 0x503   : > { %v2281_v53 = vmov 0.0   ;;  %vm2282_vm10 = vmmov 0   ;;  %v1365_v55 = vld [vmem:[#allocation11 + $0x70] sm:$0xff]  ;;  %v1366_v56 = vld [vmem:[#allocation11 + $0x78] sm:$0xff]  ;;  %v1363_v57 = vld [vmem:[#allocation11 + $0x60] sm:$0xff] }
 0x504   : > { %1881 = vmatprep.subr.bf16.mxu0 %v2281_v53  ;;  %1883 = vmatprep.mubr.msk.bf16.mxu0 %vm2282_vm10, %v2281_v53  ;;  %v1375_v58 = vpack.c.bf16 %v1366_v56, %v1365_v55  ;;  %v1364_v59 = vld [vmem:[#allocation11 + $0x68] sm:$0xff]  ;;  %v1304_v60 = vld [vmem:[%s2905_s15] sm:$0xf]  ;;  %v1362_v63 = vld [vmem:[#allocation11 + $0x58] sm:$0xff] }
 0x505   : > { %v1305_v51 = vld [vmem:[#allocation2] sm:$0xff]  ;;  %1887 = vmatprep.subr.bf16.mxu1 %v2281_v53  ;;  %1903 = vmatprep.mubr.msk.bf16.mxu1 %vm2282_vm10, %v2281_v53  ;;  %v1374_v61 = vpack.c.bf16 %v1364_v59, %v1363_v57  ;;  %v1359_v1 = vld [vmem:[#allocation11 + $0x40] sm:$0xff]  ;;  %v1360_v2 = vld [vmem:[#allocation11 + $0x48] sm:$0xff] }
 0x506   : > { %1888 = vmatpush3.bf16.msra.mxu1 %v1375_v58  ;;  %v1361_v62 = vld [vmem:[#allocation11 + $0x50] sm:$0xff]  ;;  %v1372_v3 = vpack.c.bf16 %v1360_v2, %v1359_v1  ;;  %v1358_v5 = vld [vmem:[#allocation11 + $0x38] sm:$0xff]  ;;  %v1355_v7 = vld [vmem:[#allocation11 + $0x20] sm:$0xff] }
 0x507   : > { %1889 = vmatprep.subr.bf16.mxu1 %v2281_v53  ;;  %v1373_v0 = vpack.c.bf16 %v1362_v63, %v1361_v62  ;;  %v1357_v4 = vld [vmem:[#allocation11 + $0x30] sm:$0xff]  ;;  %v1356_v8 = vld [vmem:[#allocation11 + $0x28] sm:$0xff]  ;;  %v1354_v11 = vld [vmem:[#allocation11 + $0x18] sm:$0xff] }
 0x508   : > { %v1371_v6 = vpack.c.bf16 %v1358_v5, %v1357_v4  ;;  %v1370_v9 = vpack.c.bf16 %v1356_v8, %v1355_v7  ;;  %v1353_v10 = vld [vmem:[#allocation11 + $0x10] sm:$0xff]  ;;  %v1351_v13 = vld [vmem:[#allocation11] sm:$0xff]  ;;  %v1352_v14 = vld [vmem:[#allocation11 + $0x8] sm:$0xff] }
 0x509   : > { %v1306_v52 = vld [vmem:[#allocation2 + $0x8] sm:$0xff]  ;;  %v1369_v12 = vpack.c.bf16 %v1354_v11, %v1353_v10  ;;  %v1368_v15 = vpack.c.bf16 %v1352_v14, %v1351_v13  ;;  %v1440_v16 = vld [vmem:[#allocation12 + $0x70] sm:$0xff]  ;;  %v1438_v18 = vld [vmem:[#allocation12 + $0x60] sm:$0xff] }
 0x50a   : > { %v1307_v54 = vpack.c.bf16 %v1306_v52, %v1305_v51  ;;  %1890 = vmatpush3.bf16.msra.mxu1 %v1374_v61  ;;  %v1441_v17 = vld [vmem:[#allocation12 + $0x78] sm:$0xff]  ;;  %v1439_v20 = vld [vmem:[#allocation12 + $0x68] sm:$0xff]  ;;  %v1436_v22 = vld [vmem:[#allocation12 + $0x50] sm:$0xff] }
 0x50b   : > { %1891 = vmatprep.subr.bf16.mxu1 %v2281_v53  ;;  %v1450_v19 = vpack.c.bf16 %v1441_v17, %v1440_v16  ;;  %v1449_v21 = vpack.c.bf16 %v1439_v20, %v1438_v18  ;;  %v1437_v23 = vld [vmem:[#allocation12 + $0x58] sm:$0xff]  ;;  %v1434_v25 = vld [vmem:[#allocation12 + $0x40] sm:$0xff]  ;;  %v1435_v26 = vld [vmem:[#allocation12 + $0x48] sm:$0xff] }
 0x50c   : > { %1882 = vmatpush3.bf16.msra.mxu0 %v1307_v54  ;;  %v1448_v24 = vpack.c.bf16 %v1437_v23, %v1436_v22  ;;  %v1447_v27 = vpack.c.bf16 %v1435_v26, %v1434_v25  ;;  %v1432_v28 = vld [vmem:[#allocation12 + $0x30] sm:$0xff]  ;;  %v1433_v29 = vld [vmem:[#allocation12 + $0x38] sm:$0xff]  ;;  %v1430_v31 = vld [vmem:[#allocation12 + $0x20] sm:$0xff] }
 0x50d   : > { %1907 = vmatprep.subr.bf16.mxu0 %v2281_v53  ;;  %v1446_v30 = vpack.c.bf16 %v1433_v29, %v1432_v28  ;;  %v1431_v32 = vld [vmem:[#allocation12 + $0x28] sm:$0xff]  ;;  %v1428_v40 = vld [vmem:[#allocation12 + $0x10] sm:$0xff]  ;;  %v1429_v38 = vld [vmem:[#allocation12 + $0x18] sm:$0xff] }
 0x50e   : > { %1892 = vmatpush3.bf16.msra.mxu1 %v1373_v0  ;;  %v1445_v33 = vpack.c.bf16 %v1431_v32, %v1430_v31  ;;  %v1444_v41 = vpack.c.bf16 %v1429_v38, %v1428_v40  ;;  %v1426_v42 = vld [vmem:[#allocation12] sm:$0xff]  ;;  %v1427_v43 = vld [vmem:[#allocation12 + $0x8] sm:$0xff]  ;;  %v1706_v45 = vld [vmem:[%s2906_s20] ss:$0 sm:$0xff] }
 0x50f   : > { %1884 = vmatmul.mubr.msk.bf16.vlgmr.msra.gmra.mxu0 %vm994_vm2, %v1304_v60  ;;  %1893 = vmatprep.subr.bf16.mxu1 %v2281_v53  ;;  %v1443_v44 = vpack.c.bf16 %v1427_v43, %v1426_v42 }
 0x510   : > { %1923 = vmatprep.mubr.msk.bf16.mxu0 %vm2282_vm10, %v2281_v53  ;;  %1908 = vmatpush3.bf16.msra.mxu0 %v1450_v19 }
 0x511   : > { %1909 = vmatprep.subr.bf16.mxu0 %v2281_v53 }
 0x512   : > { %1894 = vmatpush3.bf16.msra.mxu1 %v1372_v3 }
 0x513   : > { %1895 = vmatprep.subr.bf16.mxu1 %v2281_v53 }
 0x514   : > { %1910 = vmatpush3.bf16.msra.mxu0 %v1449_v21 }
 0x515   : > { %1911 = vmatprep.subr.bf16.mxu0 %v2281_v53 }
 0x516   : > { %1896 = vmatpush3.bf16.msra.mxu1 %v1371_v6 }
 0x517   : > { %1897 = vmatprep.subr.bf16.mxu1 %v2281_v53 }
 0x518   : > { %1912 = vmatpush3.bf16.msra.mxu0 %v1448_v24 }
 0x519   : > { %1913 = vmatprep.subr.bf16.mxu0 %v2281_v53 }
 0x51a   : > { %1898 = vmatpush3.bf16.msra.mxu1 %v1370_v9 }
 0x51b   : > { %1899 = vmatprep.subr.bf16.mxu1 %v2281_v53 }
 0x51c   : > { %1914 = vmatpush3.bf16.msra.mxu0 %v1447_v27 }
 0x51d   : > { %1915 = vmatprep.subr.bf16.mxu0 %v2281_v53 }
 0x51e   : > { %1900 = vmatpush3.bf16.msra.mxu1 %v1369_v12 }
 0x51f   : > { %1901 = vmatprep.subr.bf16.mxu1 %v2281_v53 }
 0x520   : > { %1916 = vmatpush3.bf16.msra.mxu0 %v1446_v30 }
 0x521   : > { %1917 = vmatprep.subr.bf16.mxu0 %v2281_v53 }
 0x522   : > { %1902 = vmatpush3.bf16.msra.mxu1 %v1368_v15 }
 0x524   : > { %1918 = vmatpush3.bf16.msra.mxu0 %v1445_v33 }
 0x525   : > { %1919 = vmatprep.subr.bf16.mxu0 %v2281_v53 }
 0x528   : > { %1920 = vmatpush3.bf16.msra.mxu0 %v1444_v41 }
 0x529   : > { %1921 = vmatprep.subr.bf16.mxu0 %v2281_v53  ;;  %v1707_v53 = vld [vmem:[%s2907_s18] ss:$0 sm:$0xff] }
 0x52c   : > { %1922 = vmatpush3.bf16.msra.mxu0 %v1443_v44 }
 0x5cf   : > { %v1345_v34 = vpop.f32.mrf.mxu0 }
 0x5d0   : > { %v1367_v35 = vpack.c.bf16 %v1345_v34, %v1345_v34 }
 0x5d1   : > { %v1885_v36 = vpop.f32.mrf.mxu0 }
 0x5d2   : > { %1904 = vmatmul.mubr.bf16.vlgmr.msra.gmra.mxu1 %v1367_v35 }
 0x5d3   : > { %v1348_v37 = vpop.f32.mrf.mxu0 }
 0x5d5   : > { %v1886_v39 = vpop.f32.mrf.mxu0 }
 0x692   : > { %v1417_v46 = vpop.f32.mrf.mxu1 }
 0x693   : > { %v1418_v47 = vadd.f32 %v1706_v45, %v1417_v46 }
 0x694   : > { %v1905_v48 = vpop.f32.mrf.mxu1 }
 0x695   : > { %vm1423_vm11 = vcmp.gt.f32.partialorder %v1418_v47, 0.0  ;;  %v1424_v49 = vmul.f32 0.01, %v1418_v47 }
 0x696   : > { %v1420_v50 = vpop.f32.mrf.mxu1 }
 0x697   : > { %v1425_v51 = vsel %vm1423_vm11, %v1418_v47, %v1424_v49 }
 0x698   : > { %v1442_v52 = vpack.c.bf16 %v1425_v51, %v1425_v51  ;;  %v1906_v54 = vpop.f32.mrf.mxu1 }
 0x69a   : > { %1924 = vmatmul.mubr.bf16.vlgmr.msra.gmra.mxu0 %v1442_v52 }
 0x75a   : > { %v1492_v55 = vpop.f32.mrf.mxu0 }
 0x75b   : > { %v1493_v56 = vadd.f32 %v1707_v53, %v1492_v55 }
 0x75c   : > { %v1925_v57 = vpop.f32.mrf.mxu0 }
 0x75d   : > { %1498 = vst [vmem:[#allocation14] sm:$0xff] %v1493_v56 }
 0x75e   : > { %v1495_v58 = vpop.f32.mrf.mxu0 }
 0x760   : > { %v1926_v59 = vpop.f32.mrf.mxu0 }
 0x761 PF: > { %p1976_p6 = scmp.eq.s32.totalorder %s2398_s0, 2  ;;  %s2283_s29 = smov [#allocation14]  }
 0x762   : > { %s1506_s3 = sshll.u32 %s2283_s29, 4  ;;  %s1507_s3 = int_to_ptr.vmem [resolvable:$true] %s1506_s3 }
 0x763   : > { %s2189_s24 = scalar_lea.vmem %s1507_s3, 128  ;;  %p2196_p11 = scmp.lt.s32.totalorder %s1507_s3, %s1507_s3 }
 0x764   : > { %p2190_p7 = scmp.ne.s32.totalorder %s1507_s3, %s2189_s24  ;;  %p2197_p1 = scmp.lt.s32.totalorder %s2189_s24, %s2189_s24 }
 0x766   : > { %p2191_p8 = pnand %p2190_p7, %p1976_p6  ;;  %p2198_p3 = por %p2197_p1, %p2196_p11 }
 0x768   : > { %p2192_p2 = pneg %p2191_p8 }
 0x76a   : > { %p2199_p9 = pnand %p2198_p3, %p2192_p2 }
 0x76c   : > { %2202 = shalt.err (!%p2199_p9)
}
 0x76d   : > { %s2908_s2 = sld [smem:[#allocation35_spill]] }
 0x773   : > { %1946 = dma.vmem_to_hbm [thread:$0]  (%p1976_p6), %s1507_s3, 128, %s2908_s2, [#allocation5]  }
 0x774   : > { %2250 = dma.done.wait (%p1976_p6), [#allocation5], 128  }
 0x775   : > { %2252 = vsyncadd (%p1976_p6), [#allocation5], 4294967168 }
 0x776 PF: > { %s2909_s30 = sld [smem:[#allocation22_spill]]  ;;  %s2912_s27 = smov %s2259_s28 }
 0x777   : > { %s2910_s17 = sld [smem:[#allocation21_spill]] }
 0x778   : > { %s2911_s29 = sld [smem:[#allocation23_spill]] }
 0x77c   : > { %p34_p5 = scmp.ge.s32.totalorder %s2909_s30, 5  }
 0x77d   : > { %s2913_s28 = smov %s2910_s17 }
 0x77e   :  { %36 = sbr.rel (!%p34_p5) target bundleno = 21 (0x15), region = 186 }
 0x783   :  { %1519 = vsyncpa [#allocation4], 1 }
 0x784   :  { %1521 = vsyncpa [#allocation4 + $0x1], 1 }
 0x785   :  { %1522 = vsyncpa [#allocation7], 1 }
 0x786   :  { %1524 = vsyncpa [#allocation7 + $0x1], 1 }
 0x787   :  { %1525 = vsyncpa [#allocation10], 1 }
 0x788   :  { %1527 = vsyncpa [#allocation10 + $0x1], 1 }
 0x789   :  { %1528 = vsyncpa [#allocation13], 1 }
 0x78a   :  { %1529 = vsyncpa [#allocation5], 1 }
 0x78b   :  { %1531 = vsyncpa [#allocation5 + $0x1], 1 }

</bundles_post_ra>
